<compile_context>
chip_gen: v5e
topology: v5e:2x2
jax: 0.10.0
libtpu: 0.0.40
codegen_flags: <defaults>
</compile_context>

<pallas_src>
import functools

import jax
import jax.numpy as jnp
from jax import lax
from jax.experimental import pallas as pl
from jax.experimental.pallas import tpu as pltpu


# ----------------------------------------------------------------------------
# Block-size helper: timesteps per grid step.
# ----------------------------------------------------------------------------
def _pick_time_block(t, b, max_block=32):
    """Prefer full unroll for short sequences; otherwise the largest divisor of t
    whose row count (tb * b) is sublane-aligned (multiple of 8)."""
    if t <= max_block:
        return t
    for tb in range(max_block, 0, -1):
        if t % tb == 0 and (tb * b) % 8 == 0:
            return tb
    return t  # fall back to a single fully-unrolled block


# murmur3-style int32 mixing constants (as signed int32).
_MIX1 = -2048144789  # 0x85EBCA6B
_MIX2 = -1028477387  # 0xC2B2AE35


# ----------------------------------------------------------------------------
# Fused kernel: input projection + LSTM recurrence + dropout + linear head.
# Grid: one "arbitrary" axis over time blocks (sequential recurrence).
# ----------------------------------------------------------------------------
def _fused_lstm_kernel(x_ref, h0_ref, c0_ref, wih_ref, whh_ref, bias_ref,
                       wlin_ref, blin_ref,
                       pred_ref, hn_ref, cn_ref,
                       gx_sc, hbuf_sc, h_sc, c_sc, *,
                       hidden, batch, t_block, keep_prob, apply_dropout, seed):
    blk = pl.program_id(0)

    @pl.when(blk == 0)
    def _():
        h_sc[...] = h0_ref[...].astype(jnp.float32)
        c_sc[...] = c0_ref[...].astype(jnp.float32)

    # ---- Hoisted input projection for the whole time block (one MXU call). ----
    gx_sc[...] = (
        jnp.dot(x_ref[...].astype(jnp.bfloat16), wih_ref[...],
                preferred_element_type=jnp.float32)
        + bias_ref[...].astype(jnp.float32))                       # (tblk*B, 4H) f32

    # ---- Sequential recurrence: only h @ W_hh^T per step; h/c live in vregs. ----
    h = h_sc[...]
    c = c_sc[...]
    for tt in range(t_block):
        gates = gx_sc[pl.ds(tt * batch, batch), :] + jnp.dot(
            h.astype(jnp.bfloat16), whh_ref[...],
            preferred_element_type=jnp.float32)                    # (B, 4H) f32

        # PyTorch gate order: input, forget, cell(g), output.
        # TODO(synk): for production sizes pick H % 128 == 0 so these lane slices
        # fall on 128-lane tile boundaries (free vreg selects vs. lane shifts).
        i_g = jax.nn.sigmoid(gates[:, 0 * hidden:1 * hidden])
        f_g = jax.nn.sigmoid(gates[:, 1 * hidden:2 * hidden])
        g_g = jnp.tanh(gates[:, 2 * hidden:3 * hidden])
        o_g = jax.nn.sigmoid(gates[:, 3 * hidden:4 * hidden])

        c = f_g * c + i_g * g_g
        h = o_g * jnp.tanh(c)
        hbuf_sc[pl.ds(tt * batch, batch), :] = h

    h_sc[...] = h
    c_sc[...] = c

    @pl.when(blk == pl.num_programs(0) - 1)
    def _():
        hn_ref[...] = h.astype(hn_ref.dtype)
        cn_ref[...] = c.astype(cn_ref.dtype)

    # ---- Dropout + linear head: one (tblk*B, H) x (H, O) GEMM per block. ----
    hblock = hbuf_sc[...]                                          # (tblk*B, H) f32
    if apply_dropout and keep_prob < 1.0:
        # TODO(synk): hash-based Bernoulli stream cannot bit-match torch's RNG;
        # keep-prob and 1/(1-p) scaling semantics are identical to nn.Dropout.
        r, k = hblock.shape
        row0 = blk * (t_block * batch)                             # global row offset
        rows = lax.broadcasted_iota(jnp.int32, (r, k), 0) + row0
        cols = lax.broadcasted_iota(jnp.int32, (r, k), 1)
        idx = rows * k + cols                                      # global element id
        hsh = idx ^ jnp.int32(seed & 0x7FFFFFFF)
        hsh = (hsh ^ lax.shift_right_logical(hsh, jnp.int32(16))) * jnp.int32(_MIX1)
        hsh = (hsh ^ lax.shift_right_logical(hsh, jnp.int32(13))) * jnp.int32(_MIX2)
        hsh = hsh ^ lax.shift_right_logical(hsh, jnp.int32(16))
        thresh = jnp.int32(int(keep_prob * float(1 << 23)))
        keep = (hsh & 0x7FFFFF) < thresh                           # Bernoulli(keep_prob)
        hblock = jnp.where(keep, hblock * (1.0 / keep_prob), 0.0)

    pred_ref[...] = (
        jnp.dot(hblock.astype(jnp.bfloat16), wlin_ref[...],
                preferred_element_type=jnp.float32)
        + blin_ref[...].astype(jnp.float32)).astype(pred_ref.dtype)


# ----------------------------------------------------------------------------
# Full module forward: lstm -> dropout -> linear   (matches LSTM.forward)
# ----------------------------------------------------------------------------
def lstm_module_forward(x_bti, hc0, params, *, dropout_rate, training,
                        dropout_seed=0, t_block=None):
    h0, c0 = hc0                                     # (1, B, H) each
    B, T, I = x_bti.shape
    H = h0.shape[-1]
    O = params["w_lin"].shape[0]

    # Layout plumbing stays in XLA: time-major, flattened (T*B, I) row slab.
    x_flat = jnp.transpose(x_bti, (1, 0, 2)).reshape(T * B, I)
    wih_t = jnp.transpose(params["w_ih"]).astype(jnp.bfloat16)      # (I, 4H)
    whh_t = jnp.transpose(params["w_hh"]).astype(jnp.bfloat16)      # (H, 4H)
    bias = (params["b_ih"] + params["b_hh"]).reshape(1, 4 * H).astype(jnp.float32)
    wlin_t = jnp.transpose(params["w_lin"]).astype(jnp.bfloat16)    # (H, O)
    blin = params["b_lin"].reshape(1, O).astype(jnp.float32)

    tblk = t_block or _pick_time_block(T, B)
    rows = tblk * B
    kernel = functools.partial(
        _fused_lstm_kernel, hidden=H, batch=B, t_block=tblk,
        keep_prob=1.0 - float(dropout_rate),
        apply_dropout=bool(training) and float(dropout_rate) > 0.0,
        seed=int(dropout_seed))

    out_shapes = (
        jax.ShapeDtypeStruct((T * B, O), jnp.float32),   # predictions, time-major rows
        jax.ShapeDtypeStruct((B, H), jnp.float32),       # h_n
        jax.ShapeDtypeStruct((B, H), jnp.float32),       # c_n
    )
    grid_spec = pltpu.PrefetchScalarGridSpec(
        num_scalar_prefetch=0,
        grid=(T // tblk,),
        in_specs=[
            pl.BlockSpec((rows, I), lambda t: (t, 0)),       # x rows of this time block
            pl.BlockSpec((B, H), lambda t: (0, 0)),          # h0
            pl.BlockSpec((B, H), lambda t: (0, 0)),          # c0
            pl.BlockSpec((I, 4 * H), lambda t: (0, 0)),      # W_ih^T  (bf16, resident)
            pl.BlockSpec((H, 4 * H), lambda t: (0, 0)),      # W_hh^T  (bf16, resident)
            pl.BlockSpec((1, 4 * H), lambda t: (0, 0)),      # b_ih + b_hh
            pl.BlockSpec((H, O), lambda t: (0, 0)),          # W_lin^T (bf16, resident)
            pl.BlockSpec((1, O), lambda t: (0, 0)),          # b_lin
        ],
        out_specs=[
            pl.BlockSpec((rows, O), lambda t: (t, 0)),       # predictions block
            pl.BlockSpec((B, H), lambda t: (0, 0)),          # h_n (written on last blk)
            pl.BlockSpec((B, H), lambda t: (0, 0)),          # c_n (written on last blk)
        ],
        scratch_shapes=[
            pltpu.VMEM((rows, 4 * H), jnp.float32),          # gx: hoisted input proj
            pltpu.VMEM((rows, H), jnp.float32),              # block's hidden states
            pltpu.VMEM((B, H), jnp.float32),                 # h carry across blocks
            pltpu.VMEM((B, H), jnp.float32),                 # c carry across blocks
        ],
    )
    preds_flat, h_n, c_n = pl.pallas_call(
        kernel,
        out_shape=out_shapes,
        grid_spec=grid_spec,
        compiler_params=pltpu.CompilerParams(
            dimension_semantics=("arbitrary",)),             # recurrence -> sequential
    )(x_flat, h0[0], c0[0], wih_t, whh_t, bias, wlin_t, blin)

    preds = jnp.transpose(preds_flat.reshape(T, B, O), (1, 0, 2))   # (B, T, O)
    return preds, (h_n[None], c_n[None])


# ----------------------------------------------------------------------------
# Pure-JAX reference (numerical sanity check; f32 end-to-end).
# ----------------------------------------------------------------------------
def _lstm_ref(x_bti, h0, c0, w_ih, w_hh, b_ih, b_hh):
    def step(carry, x_t):
        h, c = carry
        gates = x_t @ w_ih.T + b_ih + h @ w_hh.T + b_hh
        i, f, g, o = jnp.split(gates, 4, axis=-1)
        i, f, g, o = jax.nn.sigmoid(i), jax.nn.sigmoid(f), jnp.tanh(g), jax.nn.sigmoid(o)
        c = f * c + i * g
        h = o * jnp.tanh(c)
        return (h, c), h
    (h_n, c_n), outs = lax.scan(step, (h0, c0), jnp.transpose(x_bti, (1, 0, 2)))
    return jnp.transpose(outs, (1, 0, 2)), h_n, c_n


if __name__ == "__main__":
    # Small shapes consistent with the module: batch=2, seq=8, in=4, hidden=32, out=1.
    B, T = 2, 8
    I, H, O = 4, 32, 1
    dropout_rate = 0.5

    key = jax.random.PRNGKey(0)
    kx, k1, k2, k3, k4, k5, k6 = jax.random.split(key, 7)

    k_lstm = 1.0 / jnp.sqrt(H)
    k_lin = 1.0 / jnp.sqrt(H)
    params = {
        "w_ih": jax.random.uniform(k1, (4 * H, I), jnp.float32, -k_lstm, k_lstm),
        "w_hh": jax.random.uniform(k2, (4 * H, H), jnp.float32, -k_lstm, k_lstm),
        "b_ih": jax.random.uniform(k3, (4 * H,), jnp.float32, -k_lstm, k_lstm),
        "b_hh": jax.random.uniform(k4, (4 * H,), jnp.float32, -k_lstm, k_lstm),
        "w_lin": jax.random.uniform(k5, (O, H), jnp.float32, -k_lin, k_lin),
        "b_lin": jax.random.uniform(k6, (O,), jnp.float32, -k_lin, k_lin),
    }

    x = jax.random.normal(kx, (B, T, I), jnp.float32)
    h0 = jnp.zeros((1, B, H), jnp.float32)   # init_hidden()
    c0 = jnp.zeros((1, B, H), jnp.float32)

    # Train-mode forward (dropout active, as in PyTorch train mode).
    preds_train, (h_n, c_n) = lstm_module_forward(
        x, (h0, c0), params, dropout_rate=dropout_rate, training=True,
        dropout_seed=0)
    jax.block_until_ready((preds_train, h_n, c_n))
    assert preds_train.shape == (B, T, O)
    assert h_n.shape == (1, B, H) and c_n.shape == (1, B, H)
    assert bool(jnp.all(jnp.isfinite(preds_train)))

    # Eval-mode forward (deterministic) vs pure-JAX f32 reference.
    preds_eval, (hn_e, cn_e) = lstm_module_forward(
        x, (h0, c0), params, dropout_rate=dropout_rate, training=False)
    out_r, hn_r, cn_r = _lstm_ref(x, h0[0], c0[0], params["w_ih"],
                                  params["w_hh"], params["b_ih"], params["b_hh"])
    preds_ref = out_r @ params["w_lin"].T + params["b_lin"]
    # bf16 MXU operands vs f32 reference -> loose tolerance.
    assert jnp.allclose(preds_eval, preds_ref, atol=5e-2, rtol=5e-2)
    assert jnp.allclose(hn_e[0], hn_r, atol=5e-2, rtol=5e-2)
    assert jnp.allclose(cn_e[0], cn_r, atol=5e-2, rtol=5e-2)

    # Dropout must actually change the prediction (scale / zeroing).
    assert not bool(jnp.allclose(preds_train, preds_eval))

    print("KERNEL_OK")
</pallas_src>

<mosaic_0001>
module attributes {stable_mosaic.version = 11 : i64} {
  func.func @_fused_lstm_kernel(%arg0: i32, %arg1: memref<16x4xf32, #tpu.memory_space<vmem>>, %arg2: memref<2x32xf32, #tpu.memory_space<vmem>>, %arg3: memref<2x32xf32, #tpu.memory_space<vmem>>, %arg4: memref<4x128xbf16, #tpu.memory_space<vmem>>, %arg5: memref<32x128xbf16, #tpu.memory_space<vmem>>, %arg6: memref<1x128xf32, #tpu.memory_space<vmem>>, %arg7: memref<32x1xbf16, #tpu.memory_space<vmem>>, %arg8: memref<1x1xf32, #tpu.memory_space<vmem>>, %arg9: memref<16x1xf32, #tpu.memory_space<vmem>>, %arg10: memref<2x32xf32, #tpu.memory_space<vmem>>, %arg11: memref<2x32xf32, #tpu.memory_space<vmem>>, %arg12: memref<16x128xf32, #tpu.memory_space<vmem>>, %arg13: memref<16x32xf32, #tpu.memory_space<vmem>>, %arg14: memref<2x32xf32, #tpu.memory_space<vmem>>, %arg15: memref<2x32xf32, #tpu.memory_space<vmem>>) attributes {dimension_semantics = [#tpu.dimension_semantics<arbitrary>], iteration_bounds = array<i64: 1>, scalar_prefetch = 0 : i64, scratch_operands = 4 : i64, tpu.core_type = #tpu.core_type<tc>, window_params = [{transform_indices = @transform_0, window_bounds = array<i64: 16, 4>}, {pipeline_mode = #tpu.pipeline_mode<synchronous>, transform_indices = @transform_1, window_bounds = array<i64: 2, 32>}, {pipeline_mode = #tpu.pipeline_mode<synchronous>, transform_indices = @transform_2, window_bounds = array<i64: 2, 32>}, {pipeline_mode = #tpu.pipeline_mode<synchronous>, transform_indices = @transform_3, window_bounds = array<i64: 4, 128>}, {pipeline_mode = #tpu.pipeline_mode<synchronous>, transform_indices = @transform_4, window_bounds = array<i64: 32, 128>}, {pipeline_mode = #tpu.pipeline_mode<synchronous>, transform_indices = @transform_5, window_bounds = array<i64: 1, 128>}, {pipeline_mode = #tpu.pipeline_mode<synchronous>, transform_indices = @transform_6, window_bounds = array<i64: 32, 1>}, {pipeline_mode = #tpu.pipeline_mode<synchronous>, transform_indices = @transform_7, window_bounds = array<i64: 1, 1>}, {transform_indices = @transform_8, window_bounds = array<i64: 16, 1>}, {pipeline_mode = #tpu.pipeline_mode<synchronous>, transform_indices = @transform_9, window_bounds = array<i64: 2, 32>}, {pipeline_mode = #tpu.pipeline_mode<synchronous>, transform_indices = @transform_10, window_bounds = array<i64: 2, 32>}]} {
    %c0_i32 = arith.constant 0 : i32
    %0 = arith.cmpi eq, %arg0, %c0_i32 : i32
    %1 = arith.extui %0 : i1 to i32
    %c0_i32_0 = arith.constant 0 : i32
    %2 = arith.cmpi ne, %1, %c0_i32_0 : i32
    scf.if %2 {
      %c0_105 = arith.constant 0 : index
      %c0_106 = arith.constant 0 : index
      %305 = vector.load %arg2[%c0_105, %c0_106] : memref<2x32xf32, #tpu.memory_space<vmem>>, vector<2x32xf32>
      %c0_107 = arith.constant 0 : index
      %c0_108 = arith.constant 0 : index
      %306 = vector.load %arg14[%c0_107, %c0_108] : memref<2x32xf32, #tpu.memory_space<vmem>>, vector<2x32xf32>
      tpu.vector_store %arg14[%c0_107, %c0_108], %305 {strides = array<i32>} : memref<2x32xf32, #tpu.memory_space<vmem>>, vector<2x32xf32>,
      %c0_109 = arith.constant 0 : index
      %c0_110 = arith.constant 0 : index
      %307 = vector.load %arg3[%c0_109, %c0_110] : memref<2x32xf32, #tpu.memory_space<vmem>>, vector<2x32xf32>
      %c0_111 = arith.constant 0 : index
      %c0_112 = arith.constant 0 : index
      %308 = vector.load %arg15[%c0_111, %c0_112] : memref<2x32xf32, #tpu.memory_space<vmem>>, vector<2x32xf32>
      tpu.vector_store %arg15[%c0_111, %c0_112], %307 {strides = array<i32>} : memref<2x32xf32, #tpu.memory_space<vmem>>, vector<2x32xf32>,
    } else {
    }
    %c0 = arith.constant 0 : index
    %c0_1 = arith.constant 0 : index
    %3 = vector.load %arg1[%c0, %c0_1] : memref<16x4xf32, #tpu.memory_space<vmem>>, vector<16x4xf32>
    %4 = arith.truncf %3 : vector<16x4xf32> to vector<16x4xbf16>
    %c0_2 = arith.constant 0 : index
    %c0_3 = arith.constant 0 : index
    %5 = vector.load %arg4[%c0_2, %c0_3] : memref<4x128xbf16, #tpu.memory_space<vmem>>, vector<4x128xbf16>
    %cst = arith.constant dense<0.000000e+00> : vector<16x128xf32>
    %6 = tpu.matmul %4, %5, %cst {dimension_numbers = #tpu.dot_dimension_numbers<[1], [0], [0], [1], [0, 0, 1, 1], [], []>} : vector<16x4xbf16>, vector<4x128xbf16>, vector<16x128xf32> -> vector<16x128xf32>
    %c0_4 = arith.constant 0 : index
    %c0_5 = arith.constant 0 : index
    %7 = vector.load %arg6[%c0_4, %c0_5] : memref<1x128xf32, #tpu.memory_space<vmem>>, vector<1x128xf32>
    %8 = vector.broadcast %7 : vector<1x128xf32> to vector<16x128xf32>
    %9 = arith.addf %6, %8 : vector<16x128xf32>
    %c0_6 = arith.constant 0 : index
    %c0_7 = arith.constant 0 : index
    %10 = vector.load %arg12[%c0_6, %c0_7] : memref<16x128xf32, #tpu.memory_space<vmem>>, vector<16x128xf32>
    tpu.vector_store %arg12[%c0_6, %c0_7], %9 {strides = array<i32>} : memref<16x128xf32, #tpu.memory_space<vmem>>, vector<16x128xf32>,
    %c0_8 = arith.constant 0 : index
    %c0_9 = arith.constant 0 : index
    %11 = vector.load %arg14[%c0_8, %c0_9] : memref<2x32xf32, #tpu.memory_space<vmem>>, vector<2x32xf32>
    %c0_10 = arith.constant 0 : index
    %c0_11 = arith.constant 0 : index
    %12 = vector.load %arg15[%c0_10, %c0_11] : memref<2x32xf32, #tpu.memory_space<vmem>>, vector<2x32xf32>
    %c0_12 = arith.constant 0 : index
    %c0_13 = arith.constant 0 : index
    %13 = vector.load %arg12[%c0_12, %c0_13] : memref<16x128xf32, #tpu.memory_space<vmem>>, vector<2x128xf32>
    %14 = arith.truncf %11 : vector<2x32xf32> to vector<2x32xbf16>
    %c0_14 = arith.constant 0 : index
    %c0_15 = arith.constant 0 : index
    %15 = vector.load %arg5[%c0_14, %c0_15] : memref<32x128xbf16, #tpu.memory_space<vmem>>, vector<32x128xbf16>
    %cst_16 = arith.constant dense<0.000000e+00> : vector<2x128xf32>
    %16 = tpu.matmul %14, %15, %cst_16 {dimension_numbers = #tpu.dot_dimension_numbers<[1], [0], [0], [1], [0, 0, 1, 1], [], []>} : vector<2x32xbf16>, vector<32x128xbf16>, vector<2x128xf32> -> vector<2x128xf32>
    %17 = arith.addf %13, %16 : vector<2x128xf32>
    %18 = vector.extract_strided_slice %17 {offsets = [0, 0], sizes = [2, 32], strides = [1, 1]} : vector<2x128xf32> to vector<2x32xf32>
    %19 = arith.negf %18 : vector<2x32xf32>
    %20 = math.exp %19 : vector<2x32xf32>
    %cst_17 = arith.constant 1.000000e+00 : f32
    %21 = vector.broadcast %cst_17 : f32 to vector<2x32xf32>
    %22 = arith.addf %21, %20 : vector<2x32xf32>
    %23 = arith.divf %21, %22 : vector<2x32xf32>
    %24 = vector.extract_strided_slice %17 {offsets = [0, 32], sizes = [2, 32], strides = [1, 1]} : vector<2x128xf32> to vector<2x32xf32>
    %25 = arith.negf %24 : vector<2x32xf32>
    %26 = math.exp %25 : vector<2x32xf32>
    %cst_18 = arith.constant 1.000000e+00 : f32
    %27 = vector.broadcast %cst_18 : f32 to vector<2x32xf32>
    %28 = arith.addf %27, %26 : vector<2x32xf32>
    %29 = arith.divf %27, %28 : vector<2x32xf32>
    %30 = vector.extract_strided_slice %17 {offsets = [0, 64], sizes = [2, 32], strides = [1, 1]} : vector<2x128xf32> to vector<2x32xf32>
    %31 = math.tanh %30 : vector<2x32xf32>
    %32 = vector.extract_strided_slice %17 {offsets = [0, 96], sizes = [2, 32], strides = [1, 1]} : vector<2x128xf32> to vector<2x32xf32>
    %33 = arith.negf %32 : vector<2x32xf32>
    %34 = math.exp %33 : vector<2x32xf32>
    %cst_19 = arith.constant 1.000000e+00 : f32
    %35 = vector.broadcast %cst_19 : f32 to vector<2x32xf32>
    %36 = arith.addf %35, %34 : vector<2x32xf32>
    %37 = arith.divf %35, %36 : vector<2x32xf32>
    %38 = arith.mulf %29, %12 : vector<2x32xf32>
    %39 = arith.mulf %23, %31 : vector<2x32xf32>
    %40 = arith.addf %38, %39 : vector<2x32xf32>
    %41 = math.tanh %40 : vector<2x32xf32>
    %42 = arith.mulf %37, %41 : vector<2x32xf32>
    %c0_20 = arith.constant 0 : index
    %c0_21 = arith.constant 0 : index
    %43 = vector.load %arg13[%c0_20, %c0_21] : memref<16x32xf32, #tpu.memory_space<vmem>>, vector<2x32xf32>
    tpu.vector_store %arg13[%c0_20, %c0_21], %42 {strides = array<i32>} : memref<16x32xf32, #tpu.memory_space<vmem>>, vector<2x32xf32>,
    %c2 = arith.constant 2 : index
    %c0_22 = arith.constant 0 : index
    %44 = vector.load %arg12[%c2, %c0_22] : memref<16x128xf32, #tpu.memory_space<vmem>>, vector<2x128xf32>
    %45 = arith.truncf %42 : vector<2x32xf32> to vector<2x32xbf16>
    %c0_23 = arith.constant 0 : index
    %c0_24 = arith.constant 0 : index
    %46 = vector.load %arg5[%c0_23, %c0_24] : memref<32x128xbf16, #tpu.memory_space<vmem>>, vector<32x128xbf16>
    %cst_25 = arith.constant dense<0.000000e+00> : vector<2x128xf32>
    %47 = tpu.matmul %45, %46, %cst_25 {dimension_numbers = #tpu.dot_dimension_numbers<[1], [0], [0], [1], [0, 0, 1, 1], [], []>} : vector<2x32xbf16>, vector<32x128xbf16>, vector<2x128xf32> -> vector<2x128xf32>
    %48 = arith.addf %44, %47 : vector<2x128xf32>
    %49 = vector.extract_strided_slice %48 {offsets = [0, 0], sizes = [2, 32], strides = [1, 1]} : vector<2x128xf32> to vector<2x32xf32>
    %50 = arith.negf %49 : vector<2x32xf32>
    %51 = math.exp %50 : vector<2x32xf32>
    %cst_26 = arith.constant 1.000000e+00 : f32
    %52 = vector.broadcast %cst_26 : f32 to vector<2x32xf32>
    %53 = arith.addf %52, %51 : vector<2x32xf32>
    %54 = arith.divf %52, %53 : vector<2x32xf32>
    %55 = vector.extract_strided_slice %48 {offsets = [0, 32], sizes = [2, 32], strides = [1, 1]} : vector<2x128xf32> to vector<2x32xf32>
    %56 = arith.negf %55 : vector<2x32xf32>
    %57 = math.exp %56 : vector<2x32xf32>
    %cst_27 = arith.constant 1.000000e+00 : f32
    %58 = vector.broadcast %cst_27 : f32 to vector<2x32xf32>
    %59 = arith.addf %58, %57 : vector<2x32xf32>
    %60 = arith.divf %58, %59 : vector<2x32xf32>
    %61 = vector.extract_strided_slice %48 {offsets = [0, 64], sizes = [2, 32], strides = [1, 1]} : vector<2x128xf32> to vector<2x32xf32>
    %62 = math.tanh %61 : vector<2x32xf32>
    %63 = vector.extract_strided_slice %48 {offsets = [0, 96], sizes = [2, 32], strides = [1, 1]} : vector<2x128xf32> to vector<2x32xf32>
    %64 = arith.negf %63 : vector<2x32xf32>
    %65 = math.exp %64 : vector<2x32xf32>
    %cst_28 = arith.constant 1.000000e+00 : f32
    %66 = vector.broadcast %cst_28 : f32 to vector<2x32xf32>
    %67 = arith.addf %66, %65 : vector<2x32xf32>
    %68 = arith.divf %66, %67 : vector<2x32xf32>
    %69 = arith.mulf %60, %40 : vector<2x32xf32>
    %70 = arith.mulf %54, %62 : vector<2x32xf32>
    %71 = arith.addf %69, %70 : vector<2x32xf32>
    %72 = math.tanh %71 : vector<2x32xf32>
    %73 = arith.mulf %68, %72 : vector<2x32xf32>
    %c2_29 = arith.constant 2 : index
    %c0_30 = arith.constant 0 : index
    %74 = vector.load %arg13[%c2_29, %c0_30] : memref<16x32xf32, #tpu.memory_space<vmem>>, vector<2x32xf32>
    tpu.vector_store %arg13[%c2_29, %c0_30], %73 {strides = array<i32>} : memref<16x32xf32, #tpu.memory_space<vmem>>, vector<2x32xf32>,
    %c4 = arith.constant 4 : index
    %c0_31 = arith.constant 0 : index
    %75 = vector.load %arg12[%c4, %c0_31] : memref<16x128xf32, #tpu.memory_space<vmem>>, vector<2x128xf32>
    %76 = arith.truncf %73 : vector<2x32xf32> to vector<2x32xbf16>
    %c0_32 = arith.constant 0 : index
    %c0_33 = arith.constant 0 : index
    %77 = vector.load %arg5[%c0_32, %c0_33] : memref<32x128xbf16, #tpu.memory_space<vmem>>, vector<32x128xbf16>
    %cst_34 = arith.constant dense<0.000000e+00> : vector<2x128xf32>
    %78 = tpu.matmul %76, %77, %cst_34 {dimension_numbers = #tpu.dot_dimension_numbers<[1], [0], [0], [1], [0, 0, 1, 1], [], []>} : vector<2x32xbf16>, vector<32x128xbf16>, vector<2x128xf32> -> vector<2x128xf32>
    %79 = arith.addf %75, %78 : vector<2x128xf32>
    %80 = vector.extract_strided_slice %79 {offsets = [0, 0], sizes = [2, 32], strides = [1, 1]} : vector<2x128xf32> to vector<2x32xf32>
    %81 = arith.negf %80 : vector<2x32xf32>
    %82 = math.exp %81 : vector<2x32xf32>
    %cst_35 = arith.constant 1.000000e+00 : f32
    %83 = vector.broadcast %cst_35 : f32 to vector<2x32xf32>
    %84 = arith.addf %83, %82 : vector<2x32xf32>
    %85 = arith.divf %83, %84 : vector<2x32xf32>
    %86 = vector.extract_strided_slice %79 {offsets = [0, 32], sizes = [2, 32], strides = [1, 1]} : vector<2x128xf32> to vector<2x32xf32>
    %87 = arith.negf %86 : vector<2x32xf32>
    %88 = math.exp %87 : vector<2x32xf32>
    %cst_36 = arith.constant 1.000000e+00 : f32
    %89 = vector.broadcast %cst_36 : f32 to vector<2x32xf32>
    %90 = arith.addf %89, %88 : vector<2x32xf32>
    %91 = arith.divf %89, %90 : vector<2x32xf32>
    %92 = vector.extract_strided_slice %79 {offsets = [0, 64], sizes = [2, 32], strides = [1, 1]} : vector<2x128xf32> to vector<2x32xf32>
    %93 = math.tanh %92 : vector<2x32xf32>
    %94 = vector.extract_strided_slice %79 {offsets = [0, 96], sizes = [2, 32], strides = [1, 1]} : vector<2x128xf32> to vector<2x32xf32>
    %95 = arith.negf %94 : vector<2x32xf32>
    %96 = math.exp %95 : vector<2x32xf32>
    %cst_37 = arith.constant 1.000000e+00 : f32
    %97 = vector.broadcast %cst_37 : f32 to vector<2x32xf32>
    %98 = arith.addf %97, %96 : vector<2x32xf32>
    %99 = arith.divf %97, %98 : vector<2x32xf32>
    %100 = arith.mulf %91, %71 : vector<2x32xf32>
    %101 = arith.mulf %85, %93 : vector<2x32xf32>
    %102 = arith.addf %100, %101 : vector<2x32xf32>
    %103 = math.tanh %102 : vector<2x32xf32>
    %104 = arith.mulf %99, %103 : vector<2x32xf32>
    %c4_38 = arith.constant 4 : index
    %c0_39 = arith.constant 0 : index
    %105 = vector.load %arg13[%c4_38, %c0_39] : memref<16x32xf32, #tpu.memory_space<vmem>>, vector<2x32xf32>
    tpu.vector_store %arg13[%c4_38, %c0_39], %104 {strides = array<i32>} : memref<16x32xf32, #tpu.memory_space<vmem>>, vector<2x32xf32>,
    %c6 = arith.constant 6 : index
    %c0_40 = arith.constant 0 : index
    %106 = vector.load %arg12[%c6, %c0_40] : memref<16x128xf32, #tpu.memory_space<vmem>>, vector<2x128xf32>
    %107 = arith.truncf %104 : vector<2x32xf32> to vector<2x32xbf16>
    %c0_41 = arith.constant 0 : index
    %c0_42 = arith.constant 0 : index
    %108 = vector.load %arg5[%c0_41, %c0_42] : memref<32x128xbf16, #tpu.memory_space<vmem>>, vector<32x128xbf16>
    %cst_43 = arith.constant dense<0.000000e+00> : vector<2x128xf32>
    %109 = tpu.matmul %107, %108, %cst_43 {dimension_numbers = #tpu.dot_dimension_numbers<[1], [0], [0], [1], [0, 0, 1, 1], [], []>} : vector<2x32xbf16>, vector<32x128xbf16>, vector<2x128xf32> -> vector<2x128xf32>
    %110 = arith.addf %106, %109 : vector<2x128xf32>
    %111 = vector.extract_strided_slice %110 {offsets = [0, 0], sizes = [2, 32], strides = [1, 1]} : vector<2x128xf32> to vector<2x32xf32>
    %112 = arith.negf %111 : vector<2x32xf32>
    %113 = math.exp %112 : vector<2x32xf32>
    %cst_44 = arith.constant 1.000000e+00 : f32
    %114 = vector.broadcast %cst_44 : f32 to vector<2x32xf32>
    %115 = arith.addf %114, %113 : vector<2x32xf32>
    %116 = arith.divf %114, %115 : vector<2x32xf32>
    %117 = vector.extract_strided_slice %110 {offsets = [0, 32], sizes = [2, 32], strides = [1, 1]} : vector<2x128xf32> to vector<2x32xf32>
    %118 = arith.negf %117 : vector<2x32xf32>
    %119 = math.exp %118 : vector<2x32xf32>
    %cst_45 = arith.constant 1.000000e+00 : f32
    %120 = vector.broadcast %cst_45 : f32 to vector<2x32xf32>
    %121 = arith.addf %120, %119 : vector<2x32xf32>
    %122 = arith.divf %120, %121 : vector<2x32xf32>
    %123 = vector.extract_strided_slice %110 {offsets = [0, 64], sizes = [2, 32], strides = [1, 1]} : vector<2x128xf32> to vector<2x32xf32>
    %124 = math.tanh %123 : vector<2x32xf32>
    %125 = vector.extract_strided_slice %110 {offsets = [0, 96], sizes = [2, 32], strides = [1, 1]} : vector<2x128xf32> to vector<2x32xf32>
    %126 = arith.negf %125 : vector<2x32xf32>
    %127 = math.exp %126 : vector<2x32xf32>
    %cst_46 = arith.constant 1.000000e+00 : f32
    %128 = vector.broadcast %cst_46 : f32 to vector<2x32xf32>
    %129 = arith.addf %128, %127 : vector<2x32xf32>
    %130 = arith.divf %128, %129 : vector<2x32xf32>
    %131 = arith.mulf %122, %102 : vector<2x32xf32>
    %132 = arith.mulf %116, %124 : vector<2x32xf32>
    %133 = arith.addf %131, %132 : vector<2x32xf32>
    %134 = math.tanh %133 : vector<2x32xf32>
    %135 = arith.mulf %130, %134 : vector<2x32xf32>
    %c6_47 = arith.constant 6 : index
    %c0_48 = arith.constant 0 : index
    %136 = vector.load %arg13[%c6_47, %c0_48] : memref<16x32xf32, #tpu.memory_space<vmem>>, vector<2x32xf32>
    tpu.vector_store %arg13[%c6_47, %c0_48], %135 {strides = array<i32>} : memref<16x32xf32, #tpu.memory_space<vmem>>, vector<2x32xf32>,
    %c8 = arith.constant 8 : index
    %c0_49 = arith.constant 0 : index
    %137 = vector.load %arg12[%c8, %c0_49] : memref<16x128xf32, #tpu.memory_space<vmem>>, vector<2x128xf32>
    %138 = arith.truncf %135 : vector<2x32xf32> to vector<2x32xbf16>
    %c0_50 = arith.constant 0 : index
    %c0_51 = arith.constant 0 : index
    %139 = vector.load %arg5[%c0_50, %c0_51] : memref<32x128xbf16, #tpu.memory_space<vmem>>, vector<32x128xbf16>
    %cst_52 = arith.constant dense<0.000000e+00> : vector<2x128xf32>
    %140 = tpu.matmul %138, %139, %cst_52 {dimension_numbers = #tpu.dot_dimension_numbers<[1], [0], [0], [1], [0, 0, 1, 1], [], []>} : vector<2x32xbf16>, vector<32x128xbf16>, vector<2x128xf32> -> vector<2x128xf32>
    %141 = arith.addf %137, %140 : vector<2x128xf32>
    %142 = vector.extract_strided_slice %141 {offsets = [0, 0], sizes = [2, 32], strides = [1, 1]} : vector<2x128xf32> to vector<2x32xf32>
    %143 = arith.negf %142 : vector<2x32xf32>
    %144 = math.exp %143 : vector<2x32xf32>
    %cst_53 = arith.constant 1.000000e+00 : f32
    %145 = vector.broadcast %cst_53 : f32 to vector<2x32xf32>
    %146 = arith.addf %145, %144 : vector<2x32xf32>
    %147 = arith.divf %145, %146 : vector<2x32xf32>
    %148 = vector.extract_strided_slice %141 {offsets = [0, 32], sizes = [2, 32], strides = [1, 1]} : vector<2x128xf32> to vector<2x32xf32>
    %149 = arith.negf %148 : vector<2x32xf32>
    %150 = math.exp %149 : vector<2x32xf32>
    %cst_54 = arith.constant 1.000000e+00 : f32
    %151 = vector.broadcast %cst_54 : f32 to vector<2x32xf32>
    %152 = arith.addf %151, %150 : vector<2x32xf32>
    %153 = arith.divf %151, %152 : vector<2x32xf32>
    %154 = vector.extract_strided_slice %141 {offsets = [0, 64], sizes = [2, 32], strides = [1, 1]} : vector<2x128xf32> to vector<2x32xf32>
    %155 = math.tanh %154 : vector<2x32xf32>
    %156 = vector.extract_strided_slice %141 {offsets = [0, 96], sizes = [2, 32], strides = [1, 1]} : vector<2x128xf32> to vector<2x32xf32>
    %157 = arith.negf %156 : vector<2x32xf32>
    %158 = math.exp %157 : vector<2x32xf32>
    %cst_55 = arith.constant 1.000000e+00 : f32
    %159 = vector.broadcast %cst_55 : f32 to vector<2x32xf32>
    %160 = arith.addf %159, %158 : vector<2x32xf32>
    %161 = arith.divf %159, %160 : vector<2x32xf32>
    %162 = arith.mulf %153, %133 : vector<2x32xf32>
    %163 = arith.mulf %147, %155 : vector<2x32xf32>
    %164 = arith.addf %162, %163 : vector<2x32xf32>
    %165 = math.tanh %164 : vector<2x32xf32>
    %166 = arith.mulf %161, %165 : vector<2x32xf32>
    %c8_56 = arith.constant 8 : index
    %c0_57 = arith.constant 0 : index
    %167 = vector.load %arg13[%c8_56, %c0_57] : memref<16x32xf32, #tpu.memory_space<vmem>>, vector<2x32xf32>
    tpu.vector_store %arg13[%c8_56, %c0_57], %166 {strides = array<i32>} : memref<16x32xf32, #tpu.memory_space<vmem>>, vector<2x32xf32>,
    %c10 = arith.constant 10 : index
    %c0_58 = arith.constant 0 : index
    %168 = vector.load %arg12[%c10, %c0_58] : memref<16x128xf32, #tpu.memory_space<vmem>>, vector<2x128xf32>
    %169 = arith.truncf %166 : vector<2x32xf32> to vector<2x32xbf16>
    %c0_59 = arith.constant 0 : index
    %c0_60 = arith.constant 0 : index
    %170 = vector.load %arg5[%c0_59, %c0_60] : memref<32x128xbf16, #tpu.memory_space<vmem>>, vector<32x128xbf16>
    %cst_61 = arith.constant dense<0.000000e+00> : vector<2x128xf32>
    %171 = tpu.matmul %169, %170, %cst_61 {dimension_numbers = #tpu.dot_dimension_numbers<[1], [0], [0], [1], [0, 0, 1, 1], [], []>} : vector<2x32xbf16>, vector<32x128xbf16>, vector<2x128xf32> -> vector<2x128xf32>
    %172 = arith.addf %168, %171 : vector<2x128xf32>
    %173 = vector.extract_strided_slice %172 {offsets = [0, 0], sizes = [2, 32], strides = [1, 1]} : vector<2x128xf32> to vector<2x32xf32>
    %174 = arith.negf %173 : vector<2x32xf32>
    %175 = math.exp %174 : vector<2x32xf32>
    %cst_62 = arith.constant 1.000000e+00 : f32
    %176 = vector.broadcast %cst_62 : f32 to vector<2x32xf32>
    %177 = arith.addf %176, %175 : vector<2x32xf32>
    %178 = arith.divf %176, %177 : vector<2x32xf32>
    %179 = vector.extract_strided_slice %172 {offsets = [0, 32], sizes = [2, 32], strides = [1, 1]} : vector<2x128xf32> to vector<2x32xf32>
    %180 = arith.negf %179 : vector<2x32xf32>
    %181 = math.exp %180 : vector<2x32xf32>
    %cst_63 = arith.constant 1.000000e+00 : f32
    %182 = vector.broadcast %cst_63 : f32 to vector<2x32xf32>
    %183 = arith.addf %182, %181 : vector<2x32xf32>
    %184 = arith.divf %182, %183 : vector<2x32xf32>
    %185 = vector.extract_strided_slice %172 {offsets = [0, 64], sizes = [2, 32], strides = [1, 1]} : vector<2x128xf32> to vector<2x32xf32>
    %186 = math.tanh %185 : vector<2x32xf32>
    %187 = vector.extract_strided_slice %172 {offsets = [0, 96], sizes = [2, 32], strides = [1, 1]} : vector<2x128xf32> to vector<2x32xf32>
    %188 = arith.negf %187 : vector<2x32xf32>
    %189 = math.exp %188 : vector<2x32xf32>
    %cst_64 = arith.constant 1.000000e+00 : f32
    %190 = vector.broadcast %cst_64 : f32 to vector<2x32xf32>
    %191 = arith.addf %190, %189 : vector<2x32xf32>
    %192 = arith.divf %190, %191 : vector<2x32xf32>
    %193 = arith.mulf %184, %164 : vector<2x32xf32>
    %194 = arith.mulf %178, %186 : vector<2x32xf32>
    %195 = arith.addf %193, %194 : vector<2x32xf32>
    %196 = math.tanh %195 : vector<2x32xf32>
    %197 = arith.mulf %192, %196 : vector<2x32xf32>
    %c10_65 = arith.constant 10 : index
    %c0_66 = arith.constant 0 : index
    %198 = vector.load %arg13[%c10_65, %c0_66] : memref<16x32xf32, #tpu.memory_space<vmem>>, vector<2x32xf32>
    tpu.vector_store %arg13[%c10_65, %c0_66], %197 {strides = array<i32>} : memref<16x32xf32, #tpu.memory_space<vmem>>, vector<2x32xf32>,
    %c12 = arith.constant 12 : index
    %c0_67 = arith.constant 0 : index
    %199 = vector.load %arg12[%c12, %c0_67] : memref<16x128xf32, #tpu.memory_space<vmem>>, vector<2x128xf32>
    %200 = arith.truncf %197 : vector<2x32xf32> to vector<2x32xbf16>
    %c0_68 = arith.constant 0 : index
    %c0_69 = arith.constant 0 : index
    %201 = vector.load %arg5[%c0_68, %c0_69] : memref<32x128xbf16, #tpu.memory_space<vmem>>, vector<32x128xbf16>
    %cst_70 = arith.constant dense<0.000000e+00> : vector<2x128xf32>
    %202 = tpu.matmul %200, %201, %cst_70 {dimension_numbers = #tpu.dot_dimension_numbers<[1], [0], [0], [1], [0, 0, 1, 1], [], []>} : vector<2x32xbf16>, vector<32x128xbf16>, vector<2x128xf32> -> vector<2x128xf32>
    %203 = arith.addf %199, %202 : vector<2x128xf32>
    %204 = vector.extract_strided_slice %203 {offsets = [0, 0], sizes = [2, 32], strides = [1, 1]} : vector<2x128xf32> to vector<2x32xf32>
    %205 = arith.negf %204 : vector<2x32xf32>
    %206 = math.exp %205 : vector<2x32xf32>
    %cst_71 = arith.constant 1.000000e+00 : f32
    %207 = vector.broadcast %cst_71 : f32 to vector<2x32xf32>
    %208 = arith.addf %207, %206 : vector<2x32xf32>
    %209 = arith.divf %207, %208 : vector<2x32xf32>
    %210 = vector.extract_strided_slice %203 {offsets = [0, 32], sizes = [2, 32], strides = [1, 1]} : vector<2x128xf32> to vector<2x32xf32>
    %211 = arith.negf %210 : vector<2x32xf32>
    %212 = math.exp %211 : vector<2x32xf32>
    %cst_72 = arith.constant 1.000000e+00 : f32
    %213 = vector.broadcast %cst_72 : f32 to vector<2x32xf32>
    %214 = arith.addf %213, %212 : vector<2x32xf32>
    %215 = arith.divf %213, %214 : vector<2x32xf32>
    %216 = vector.extract_strided_slice %203 {offsets = [0, 64], sizes = [2, 32], strides = [1, 1]} : vector<2x128xf32> to vector<2x32xf32>
    %217 = math.tanh %216 : vector<2x32xf32>
    %218 = vector.extract_strided_slice %203 {offsets = [0, 96], sizes = [2, 32], strides = [1, 1]} : vector<2x128xf32> to vector<2x32xf32>
    %219 = arith.negf %218 : vector<2x32xf32>
    %220 = math.exp %219 : vector<2x32xf32>
    %cst_73 = arith.constant 1.000000e+00 : f32
    %221 = vector.broadcast %cst_73 : f32 to vector<2x32xf32>
    %222 = arith.addf %221, %220 : vector<2x32xf32>
    %223 = arith.divf %221, %222 : vector<2x32xf32>
    %224 = arith.mulf %215, %195 : vector<2x32xf32>
    %225 = arith.mulf %209, %217 : vector<2x32xf32>
    %226 = arith.addf %224, %225 : vector<2x32xf32>
    %227 = math.tanh %226 : vector<2x32xf32>
    %228 = arith.mulf %223, %227 : vector<2x32xf32>
    %c12_74 = arith.constant 12 : index
    %c0_75 = arith.constant 0 : index
    %229 = vector.load %arg13[%c12_74, %c0_75] : memref<16x32xf32, #tpu.memory_space<vmem>>, vector<2x32xf32>
    tpu.vector_store %arg13[%c12_74, %c0_75], %228 {strides = array<i32>} : memref<16x32xf32, #tpu.memory_space<vmem>>, vector<2x32xf32>,
    %c14 = arith.constant 14 : index
    %c0_76 = arith.constant 0 : index
    %230 = vector.load %arg12[%c14, %c0_76] : memref<16x128xf32, #tpu.memory_space<vmem>>, vector<2x128xf32>
    %231 = arith.truncf %228 : vector<2x32xf32> to vector<2x32xbf16>
    %c0_77 = arith.constant 0 : index
    %c0_78 = arith.constant 0 : index
    %232 = vector.load %arg5[%c0_77, %c0_78] : memref<32x128xbf16, #tpu.memory_space<vmem>>, vector<32x128xbf16>
    %cst_79 = arith.constant dense<0.000000e+00> : vector<2x128xf32>
    %233 = tpu.matmul %231, %232, %cst_79 {dimension_numbers = #tpu.dot_dimension_numbers<[1], [0], [0], [1], [0, 0, 1, 1], [], []>} : vector<2x32xbf16>, vector<32x128xbf16>, vector<2x128xf32> -> vector<2x128xf32>
    %234 = arith.addf %230, %233 : vector<2x128xf32>
    %235 = vector.extract_strided_slice %234 {offsets = [0, 0], sizes = [2, 32], strides = [1, 1]} : vector<2x128xf32> to vector<2x32xf32>
    %236 = arith.negf %235 : vector<2x32xf32>
    %237 = math.exp %236 : vector<2x32xf32>
    %cst_80 = arith.constant 1.000000e+00 : f32
    %238 = vector.broadcast %cst_80 : f32 to vector<2x32xf32>
    %239 = arith.addf %238, %237 : vector<2x32xf32>
    %240 = arith.divf %238, %239 : vector<2x32xf32>
    %241 = vector.extract_strided_slice %234 {offsets = [0, 32], sizes = [2, 32], strides = [1, 1]} : vector<2x128xf32> to vector<2x32xf32>
    %242 = arith.negf %241 : vector<2x32xf32>
    %243 = math.exp %242 : vector<2x32xf32>
    %cst_81 = arith.constant 1.000000e+00 : f32
    %244 = vector.broadcast %cst_81 : f32 to vector<2x32xf32>
    %245 = arith.addf %244, %243 : vector<2x32xf32>
    %246 = arith.divf %244, %245 : vector<2x32xf32>
    %247 = vector.extract_strided_slice %234 {offsets = [0, 64], sizes = [2, 32], strides = [1, 1]} : vector<2x128xf32> to vector<2x32xf32>
    %248 = math.tanh %247 : vector<2x32xf32>
    %249 = vector.extract_strided_slice %234 {offsets = [0, 96], sizes = [2, 32], strides = [1, 1]} : vector<2x128xf32> to vector<2x32xf32>
    %250 = arith.negf %249 : vector<2x32xf32>
    %251 = math.exp %250 : vector<2x32xf32>
    %cst_82 = arith.constant 1.000000e+00 : f32
    %252 = vector.broadcast %cst_82 : f32 to vector<2x32xf32>
    %253 = arith.addf %252, %251 : vector<2x32xf32>
    %254 = arith.divf %252, %253 : vector<2x32xf32>
    %255 = arith.mulf %246, %226 : vector<2x32xf32>
    %256 = arith.mulf %240, %248 : vector<2x32xf32>
    %257 = arith.addf %255, %256 : vector<2x32xf32>
    %258 = math.tanh %257 : vector<2x32xf32>
    %259 = arith.mulf %254, %258 : vector<2x32xf32>
    %c14_83 = arith.constant 14 : index
    %c0_84 = arith.constant 0 : index
    %260 = vector.load %arg13[%c14_83, %c0_84] : memref<16x32xf32, #tpu.memory_space<vmem>>, vector<2x32xf32>
    tpu.vector_store %arg13[%c14_83, %c0_84], %259 {strides = array<i32>} : memref<16x32xf32, #tpu.memory_space<vmem>>, vector<2x32xf32>,
    %c0_85 = arith.constant 0 : index
    %c0_86 = arith.constant 0 : index
    %261 = vector.load %arg14[%c0_85, %c0_86] : memref<2x32xf32, #tpu.memory_space<vmem>>, vector<2x32xf32>
    tpu.vector_store %arg14[%c0_85, %c0_86], %259 {strides = array<i32>} : memref<2x32xf32, #tpu.memory_space<vmem>>, vector<2x32xf32>,
    %c0_87 = arith.constant 0 : index
    %c0_88 = arith.constant 0 : index
    %262 = vector.load %arg15[%c0_87, %c0_88] : memref<2x32xf32, #tpu.memory_space<vmem>>, vector<2x32xf32>
    tpu.vector_store %arg15[%c0_87, %c0_88], %257 {strides = array<i32>} : memref<2x32xf32, #tpu.memory_space<vmem>>, vector<2x32xf32>,
    %c0_i32_89 = arith.constant 0 : i32
    %263 = arith.cmpi eq, %arg0, %c0_i32_89 : i32
    %264 = arith.extui %263 : i1 to i32
    %c0_i32_90 = arith.constant 0 : i32
    %265 = arith.cmpi ne, %264, %c0_i32_90 : i32
    scf.if %265 {
      %c0_105 = arith.constant 0 : index
      %c0_106 = arith.constant 0 : index
      %305 = vector.load %arg10[%c0_105, %c0_106] : memref<2x32xf32, #tpu.memory_space<vmem>>, vector<2x32xf32>
      tpu.vector_store %arg10[%c0_105, %c0_106], %259 {strides = array<i32>} : memref<2x32xf32, #tpu.memory_space<vmem>>, vector<2x32xf32>,
      %c0_107 = arith.constant 0 : index
      %c0_108 = arith.constant 0 : index
      %306 = vector.load %arg11[%c0_107, %c0_108] : memref<2x32xf32, #tpu.memory_space<vmem>>, vector<2x32xf32>
      tpu.vector_store %arg11[%c0_107, %c0_108], %257 {strides = array<i32>} : memref<2x32xf32, #tpu.memory_space<vmem>>, vector<2x32xf32>,
    } else {
    }
    %c0_91 = arith.constant 0 : index
    %c0_92 = arith.constant 0 : index
    %266 = vector.load %arg13[%c0_91, %c0_92] : memref<16x32xf32, #tpu.memory_space<vmem>>, vector<16x32xf32>
    %c16_i32 = arith.constant 16 : i32
    %267 = arith.muli %arg0, %c16_i32 : i32
    %268 = tpu.iota {dimensions = array<i32: 0>} : vector<16x32xi32>
    %269 = vector.broadcast %267 : i32 to vector<16x32xi32>
    %270 = arith.addi %268, %269 : vector<16x32xi32>
    %271 = tpu.iota {dimensions = array<i32: 1>} : vector<16x32xi32>
    %c32_i32 = arith.constant 32 : i32
    %272 = vector.broadcast %c32_i32 : i32 to vector<16x32xi32>
    %273 = arith.muli %270, %272 : vector<16x32xi32>
    %274 = arith.addi %273, %271 : vector<16x32xi32>
    %c0_i32_93 = arith.constant 0 : i32
    %275 = vector.broadcast %c0_i32_93 : i32 to vector<16x32xi32>
    %276 = arith.xori %274, %275 : vector<16x32xi32>
    %c16_i32_94 = arith.constant 16 : i32
    %277 = vector.broadcast %c16_i32_94 : i32 to vector<16x32xi32>
    %278 = arith.shrui %276, %277 : vector<16x32xi32>
    %279 = arith.xori %276, %278 : vector<16x32xi32>
    %c-2048144789_i32 = arith.constant -2048144789 : i32
    %280 = vector.broadcast %c-2048144789_i32 : i32 to vector<16x32xi32>
    %281 = arith.muli %279, %280 : vector<16x32xi32>
    %c13_i32 = arith.constant 13 : i32
    %282 = vector.broadcast %c13_i32 : i32 to vector<16x32xi32>
    %283 = arith.shrui %281, %282 : vector<16x32xi32>
    %284 = arith.xori %281, %283 : vector<16x32xi32>
    %c-1028477387_i32 = arith.constant -1028477387 : i32
    %285 = vector.broadcast %c-1028477387_i32 : i32 to vector<16x32xi32>
    %286 = arith.muli %284, %285 : vector<16x32xi32>
    %c16_i32_95 = arith.constant 16 : i32
    %287 = vector.broadcast %c16_i32_95 : i32 to vector<16x32xi32>
    %288 = arith.shrui %286, %287 : vector<16x32xi32>
    %289 = arith.xori %286, %288 : vector<16x32xi32>
    %c8388607_i32 = arith.constant 8388607 : i32
    %290 = vector.broadcast %c8388607_i32 : i32 to vector<16x32xi32>
    %291 = arith.andi %289, %290 : vector<16x32xi32>
    %c4194304_i32 = arith.constant 4194304 : i32
    %292 = vector.broadcast %c4194304_i32 : i32 to vector<16x32xi32>
    %293 = arith.cmpi slt, %291, %292 : vector<16x32xi32>
    %cst_96 = arith.constant 2.000000e+00 : f32
    %294 = vector.broadcast %cst_96 : f32 to vector<16x32xf32>
    %295 = arith.mulf %266, %294 : vector<16x32xf32>
    %cst_97 = arith.constant 0.000000e+00 : f32
    %296 = vector.broadcast %cst_97 : f32 to vector<16x32xf32>
    %297 = arith.select %293, %295, %296 : vector<16x32xi1>, vector<16x32xf32>
    %298 = arith.truncf %297 : vector<16x32xf32> to vector<16x32xbf16>
    %c0_98 = arith.constant 0 : index
    %c0_99 = arith.constant 0 : index
    %299 = vector.load %arg7[%c0_98, %c0_99] : memref<32x1xbf16, #tpu.memory_space<vmem>>, vector<32x1xbf16>
    %cst_100 = arith.constant dense<0.000000e+00> : vector<16x1xf32>
    %300 = tpu.matmul %298, %299, %cst_100 {dimension_numbers = #tpu.dot_dimension_numbers<[1], [0], [0], [1], [0, 0, 1, 1], [], []>} : vector<16x32xbf16>, vector<32x1xbf16>, vector<16x1xf32> -> vector<16x1xf32>
    %c0_101 = arith.constant 0 : index
    %c0_102 = arith.constant 0 : index
    %301 = vector.load %arg8[%c0_101, %c0_102] : memref<1x1xf32, #tpu.memory_space<vmem>>, vector<1x1xf32>
    %302 = vector.broadcast %301 : vector<1x1xf32> to vector<16x1xf32>
    %303 = arith.addf %300, %302 : vector<16x1xf32>
    %c0_103 = arith.constant 0 : index
    %c0_104 = arith.constant 0 : index
    %304 = vector.load %arg9[%c0_103, %c0_104] : memref<16x1xf32, #tpu.memory_space<vmem>>, vector<16x1xf32>
    tpu.vector_store %arg9[%c0_103, %c0_104], %303 {strides = array<i32>} : memref<16x1xf32, #tpu.memory_space<vmem>>, vector<16x1xf32>,
    return
  }
  func.func @transform_0(%arg0: i32) -> (i32, i32) {
    %c0_i32 = arith.constant 0 : i32
    %c0_i32_0 = arith.constant 0 : i32
    return %arg0, %c0_i32 : i32, i32
  }
  func.func @transform_1(%arg0: i32) -> (i32, i32) {
    %c0_i32 = arith.constant 0 : i32
    %c0_i32_0 = arith.constant 0 : i32
    %c0_i32_1 = arith.constant 0 : i32
    return %c0_i32, %c0_i32_0 : i32, i32
  }
  func.func @transform_2(%arg0: i32) -> (i32, i32) {
    %c0_i32 = arith.constant 0 : i32
    %c0_i32_0 = arith.constant 0 : i32
    %c0_i32_1 = arith.constant 0 : i32
    return %c0_i32, %c0_i32_0 : i32, i32
  }
  func.func @transform_3(%arg0: i32) -> (i32, i32) {
    %c0_i32 = arith.constant 0 : i32
    %c0_i32_0 = arith.constant 0 : i32
    %c0_i32_1 = arith.constant 0 : i32
    return %c0_i32, %c0_i32_0 : i32, i32
  }
  func.func @transform_4(%arg0: i32) -> (i32, i32) {
    %c0_i32 = arith.constant 0 : i32
    %c0_i32_0 = arith.constant 0 : i32
    %c0_i32_1 = arith.constant 0 : i32
    return %c0_i32, %c0_i32_0 : i32, i32
  }
  func.func @transform_5(%arg0: i32) -> (i32, i32) {
    %c0_i32 = arith.constant 0 : i32
    %c0_i32_0 = arith.constant 0 : i32
    %c0_i32_1 = arith.constant 0 : i32
    return %c0_i32, %c0_i32_0 : i32, i32
  }
  func.func @transform_6(%arg0: i32) -> (i32, i32) {
    %c0_i32 = arith.constant 0 : i32
    %c0_i32_0 = arith.constant 0 : i32
    %c0_i32_1 = arith.constant 0 : i32
    return %c0_i32, %c0_i32_0 : i32, i32
  }
  func.func @transform_7(%arg0: i32) -> (i32, i32) {
    %c0_i32 = arith.constant 0 : i32
    %c0_i32_0 = arith.constant 0 : i32
    %c0_i32_1 = arith.constant 0 : i32
    return %c0_i32, %c0_i32_0 : i32, i32
  }
  func.func @transform_8(%arg0: i32) -> (i32, i32) {
    %c0_i32 = arith.constant 0 : i32
    %c0_i32_0 = arith.constant 0 : i32
    return %arg0, %c0_i32 : i32, i32
  }
  func.func @transform_9(%arg0: i32) -> (i32, i32) {
    %c0_i32 = arith.constant 0 : i32
    %c0_i32_0 = arith.constant 0 : i32
    %c0_i32_1 = arith.constant 0 : i32
    return %c0_i32, %c0_i32_0 : i32, i32
  }
  func.func @transform_10(%arg0: i32) -> (i32, i32) {
    %c0_i32 = arith.constant 0 : i32
    %c0_i32_0 = arith.constant 0 : i32
    %c0_i32_1 = arith.constant 0 : i32
    return %c0_i32, %c0_i32_0 : i32, i32
  }
}

</mosaic_0001>

<bundles_post_ra>
// kernel: tpu_custom_call.1
= control target key start
LH: loop header
LB: loop body
LE: loop exit
PB: predicated region body
PF: predicated region fallthrough
CT: control target
= control target key end

     0   :  { %s1321_s0 = inlined_call_operand.vmem [shape: f32[16,4], index: 0, kind: input, shape index: {}]   ;;  %s1322_s1 = inlined_call_operand.vmem [shape: f32[2,32], index: 1, kind: input, shape index: {}]   ;;  %s1323_s2 = inlined_call_operand.vmem [shape: f32[2,32], index: 2, kind: input, shape index: {}]   ;;  %s1324_s3 = inlined_call_operand.vmem [shape: bf16[4,128], index: 3, kind: input, shape index: {}]   ;;  %s1325_s4 = inlined_call_operand.vmem [shape: bf16[32,128], index: 4, kind: input, shape index: {}]   ;;  %s1326_s5 = inlined_call_operand.vmem [shape: f32[1,128], index: 5, kind: input, shape index: {}]   ;;  %s1327_s6 = inlined_call_operand.vmem [shape: bf16[32,1], index: 6, kind: input, shape index: {}]   ;;  %s1328_s7 = inlined_call_operand.<no memory space> [shape: f32[1,1], index: 7, kind: input, shape index: {}]   ;;  %s1329_s8 = inlined_call_operand.vmem [shape: f32[16,1], index: 8, kind: output, shape index: {0}]   ;;  %s1330_s9 = inlined_call_operand.hbm [shape: f32[2,32], index: 9, kind: output, shape index: {1}]   ;;  %s1331_s10 = inlined_call_operand.hbm [shape: f32[2,32], index: 10, kind: output, shape index: {2}]  }
   0x1   :  { %v16_v0 = vstv %s1328_s7 }
   0x2   :  { %17 = vst [vmem:[#allocation6] sm:$0x1] %v16_v0 }
   0x3   :  { %18 = vsyncpa [#allocation8], 0  ;;  %v49_v1 = vld [vmem:[%s1324_s3] sm:$0x3]  ;;  %vm58_vm0 = vcmask 1041408   ;;  %v941_v2 = vld [vmem:[%s1325_s4 + $0x8] sm:$0xff] }
   0x4   :  { %v46_v3 = vld [vmem:[%s1321_s0] sm:$0xff]  ;;  %v60_v4 = vsel %vm58_vm0, %v49_v1, 0  ;;  %v47_v5 = vld [vmem:[%s1321_s0 + $0x8] sm:$0xff]  ;;  %vm42_vm1 = vcmask 254976   ;;  %108 = vmatpush.bf16.msra.mxu1 %v941_v2  ;;  %vm54_vm2 = vcmask 31744  }
   0x5   :  { %v41_v6 = vld [vmem:[%s1322_s1] sm:$0x3]  ;;  %69 = vmatpush.bf16.msra.mxu0 %v60_v4  ;;  %v48_v7 = vpack.c.bf16 %v47_v5, %v46_v3 }
   0x6   :  { %v940_v8 = vld [vmem:[%s1325_s4] sm:$0xff]  ;;  %43 = vst.msk [vmem:[#allocation4] sm:$0x3] %vm42_vm1, %v41_v6 }
   0x7   :  { %19 = vsyncpa [#allocation10], 0  ;;  %vm98_vm3 = vcmask 261120   ;;  %v44_v11 = vld [vmem:[%s1323_s2] sm:$0x3]  ;;  %s1081_s27 = smov 64  }
   0x8   :  { %850 = vmatmul.msk.bf16.vlgmr.msra.gmra.mxu0 %vm54_vm2, %v48_v7  ;;  %109 = vmatpush.bf16.msra.mxu1 %v940_v8  ;;  %45 = vst.msk [vmem:[#allocation5] sm:$0x3] %vm42_vm1, %v44_v11  ;;  %v963_v12 = vld [vmem:[%s1326_s5] ss:$0 sm:$0xff]  ;;  %s1082_s2 = smov 32   ;;  %v943_v43 = vld [vmem:[%s1325_s4 + $0x8] sm:$0xff] }
   0x9   :  { %193 = vmatpush.bf16.msra.mxu2 %v943_v43  ;;  %v942_v44 = vld [vmem:[%s1325_s4] sm:$0xff]  ;;  %s823_s16 = sshll.u32 %s1330_s9, 4  ;;  %s1085_s17 = smov [#allocation9]   ;;  %s824_s16 = int_to_ptr.hbm [resolvable:$true] %s823_s16 }
   0xa   :  { %s832_s18 = sshll.u32 %s1085_s17, 4  ;;  %s834_s21 = sshll.u32 %s1331_s10, 4  ;;  %s833_s18 = int_to_ptr.vmem [resolvable:$true] %s832_s18  ;;  %s835_s21 = int_to_ptr.hbm [resolvable:$true] %s834_s21 }
   0xd   :  { %v78_v9 = vld [vmem:[#allocation4] sm:$0x3]  ;;  %194 = vmatpush.bf16.msra.mxu2 %v942_v44 }
   0xe   :  { %v81_v10 = vpack.c.bf16 %v78_v9, %v78_v9  ;;  %v945_v9 = vld [vmem:[%s1325_s4 + $0x8] sm:$0xff] }
   0xf   :  { %v79_v22 = vld [vmem:[#allocation5] sm:$0x3]  ;;  %273 = vmatpush.bf16.msra.mxu3 %v945_v9 }
  0x10   :  { %859 = vmatmul.msk.bf16.vlgmr.msra.gmra.mxu1 %vm98_vm3, %v81_v10  ;;  %v944_v10 = vld [vmem:[%s1325_s4] sm:$0xff] }
  0x13   :  { %274 = vmatpush.bf16.msra.mxu3 %v944_v10 }
  0x85   :  { %v71_v13 = vpop.f32.mrf.mxu0 }
  0x86   :  { %v72_v14 = vadd.f32 %v963_v12, %v71_v13 }
  0x88   :  { %76 = vst [vmem:[#allocation2] sm:$0xff] %v72_v14 }
  0x8d   :  { %v111_v15 = vpop.f32.mrf.mxu1  ;;  %v73_v16 = vpop.f32.mrf.mxu0 }
  0x8e   :  { %v74_v17 = vadd.f32 %v963_v12, %v73_v16 }
  0x8f   :  { %v80_v18 = vld [vmem:[#allocation2] sm:$0x3]  ;;  %v163_v49 = vld [vmem:[#allocation2 + $0x2] sm:$0x3] }
  0x90   :  { %v115_v19 = vadd.f32 %v111_v15, %v80_v18  ;;  %77 = vst [vmem:[#allocation2 + $0x8] sm:$0xff] %v74_v17  ;;  %v243_v15 = vld [vmem:[#allocation2 + $0x4] sm:$0x3] }
  0x92   :  { %965 = vtanh.f32 %v115_v19  ;;  %v860_v23 = vmul.f32 -1.442695, %v115_v19 }
  0x94   :  { %967 = vpow2.f32 %v860_v23 }
  0x95   :  { %v113_v20 = vpop.f32.mrf.mxu1 }
  0x98   :  { %v966_v21 = vpop.eup %965 }
  0x99   :  { %142 = vrot.lane.b32.xlu0 %v966_v21, %s1081_s27 }
  0x9a   :  { %v968_v24 = vpop.eup %967 }
  0x9b   :  { %v119_v25 = vadd.f32 1.0, %v968_v24 }
  0x9d   :  { %969 = vrcp.f32 %v119_v25  ;;  %v131_v31 = vand.u32 2147483648, %v119_v25  ;;  %vm125_vm5 = vweird.f32 %v119_v25  ;;  %v129_v32 = vand.u32 2147483647, %v119_v25 }
  0x9f   :  { %v132_v34 = vor.u32 1.1754944e-38, %v131_v31  ;;  %vm130_vm7 = vcmp.eq.f32.partialorder %v129_v32, 8.507059e+37 }
  0xa1   :  { %137 = vrot.lane.b32.xlu0 %v79_v22, %s1082_s2 }
  0xa3   :  { %v970_v26 = vpop.eup %969 }
  0xa4   :  { %v121_v27 = vmul.f32 %v970_v26, %v119_v25  ;;  %vm126_vm4 = vweird.f32 %v970_v26 }
  0xa5   :  { %vm127_vm6 = vmor %vm125_vm5, %vm126_vm4 }
  0xa6   :  { %v122_v28 = vsub.f32 1.0, %v121_v27 }
  0xa8   :  { %v123_v29 = vmul.f32 %v970_v26, %v122_v28 }
  0xaa   :  { %v124_v30 = vadd.f32 %v970_v26, %v123_v29 }
  0xac   :  { %v128_v33 = vsel %vm127_vm6, %v970_v26, %v124_v30 }
  0xad   :  { %v133_v36 = vsel %vm130_vm7, %v132_v34, %v128_v33 }
 0x10b   :  { %v143_v35 = vpop.permute.xlu0 %142 }
 0x10c   :  { %v145_v37 = vmul.f32 %v143_v35, %v133_v36 }
 0x10e   :  { %147 = vrot.lane.b32.xlu1 %v145_v37, %s1082_s2 }
 0x113   :  { %v138_v38 = vpop.permute.xlu0 %137 }
 0x114   :  { %v140_v39 = vmul.f32 %v138_v38, %v133_v36 }
 0x180   :  { %v148_v40 = vpop.permute.xlu1 %147 }
 0x181   :  { %v150_v41 = vadd.f32 %v148_v40, %v140_v39  ;;  %v947_v39 = vld [vmem:[%s1325_s4 + $0x8] sm:$0xff]  ;;  %v946_v40 = vld [vmem:[%s1325_s4] sm:$0xff] }
 0x182   :  { %353 = vmatpush.bf16.msrb.mxu0 %v947_v39 }
 0x183   :  { %971 = vtanh.f32 %v150_v41 }
 0x186   :  { %354 = vmatpush.bf16.msrb.mxu0 %v946_v40 }
 0x189   :  { %v972_v42 = vpop.eup %971 }
 0x18a   :  { %153 = vrot.lane.b32.xlu1 %v972_v42, %s1081_s27 }
 0x1fc   :  { %v154_v45 = vpop.permute.xlu1 %153 }
 0x1fd   :  { %v1181_v46 = vmul.f32 %v154_v45, %v133_v36  ;;  %v323_v45 = vld [vmem:[#allocation2 + $0x6] sm:$0x3] }
 0x1ff   :  { %v164_v47 = vpack.c.bf16 %v1181_v46, %v1181_v46 }
 0x201   :  { %170 = vrot.lane.b32.xlu2 %v164_v47, %s1082_s2 }
 0x25b   :  { %v171_v48 = vpop.permute.xlu2 %170 }
 0x25c   :  { %869 = vmatmul.msk.bf16.vlgmr.msra.gmra.mxu2 %vm98_vm3, %v171_v48 }
 0x2df   :  { %v196_v50 = vpop.f32.mrf.mxu2 }
 0x2e0   :  { %v200_v51 = vadd.f32 %v196_v50, %v163_v49 }
 0x2e2   :  { %973 = vtanh.f32 %v200_v51  ;;  %v870_v54 = vmul.f32 -1.442695, %v200_v51 }
 0x2e4   :  { %975 = vpow2.f32 %v870_v54 }
 0x2e7   :  { %v198_v52 = vpop.f32.mrf.mxu2 }
 0x2e8   :  { %v974_v53 = vpop.eup %973 }
 0x2e9   :  { %223 = vrot.lane.b32.xlu2 %v974_v53, %s1081_s27 }
 0x2ea   :  { %v976_v55 = vpop.eup %975 }
 0x2eb   :  { %v204_v56 = vadd.f32 1.0, %v976_v55 }
 0x2ed   :  { %977 = vrcp.f32 %v204_v56  ;;  %v216_v62 = vand.u32 2147483648, %v204_v56  ;;  %vm210_vm9 = vweird.f32 %v204_v56  ;;  %v214_v63 = vand.u32 2147483647, %v204_v56 }
 0x2ef   :  { %v217_v1 = vor.u32 1.1754944e-38, %v216_v62  ;;  %vm215_vm11 = vcmp.eq.f32.partialorder %v214_v63, 8.507059e+37 }
 0x2f3   :  { %v978_v57 = vpop.eup %977 }
 0x2f4   :  { %v206_v58 = vmul.f32 %v978_v57, %v204_v56  ;;  %vm211_vm8 = vweird.f32 %v978_v57 }
 0x2f5   :  { %vm212_vm10 = vmor %vm210_vm9, %vm211_vm8 }
 0x2f6   :  { %v207_v59 = vsub.f32 1.0, %v206_v58 }
 0x2f8   :  { %v208_v60 = vmul.f32 %v978_v57, %v207_v59 }
 0x2fa   :  { %v209_v61 = vadd.f32 %v978_v57, %v208_v60 }
 0x2fc   :  { %v213_v0 = vsel %vm212_vm10, %v978_v57, %v209_v61 }
 0x2fd   :  { %v218_v3 = vsel %vm215_vm11, %v217_v1, %v213_v0 }
 0x2fe   :  { %v221_v5 = vmul.f32 %v218_v3, %v150_v41 }
 0x343   :  { %v224_v2 = vpop.permute.xlu2 %223 }
 0x344   :  { %v226_v4 = vmul.f32 %v224_v2, %v218_v3 }
 0x346   :  { %228 = vrot.lane.b32.xlu0 %v226_v4, %s1082_s2 }
 0x3b8   :  { %v229_v6 = vpop.permute.xlu0 %228 }
 0x3b9   :  { %v231_v7 = vadd.f32 %v229_v6, %v221_v5  ;;  %v949_v6 = vld [vmem:[%s1325_s4 + $0x8] sm:$0xff] }
 0x3ba   :  { %433 = vmatpush.bf16.msrb.mxu1 %v949_v6  ;;  %v952_v6 = vld [vmem:[%s1325_s4] sm:$0xff] }
 0x3bb   :  { %979 = vtanh.f32 %v231_v7 }
 0x3c1   :  { %v980_v8 = vpop.eup %979 }
 0x3c2   :  { %234 = vrot.lane.b32.xlu1 %v980_v8, %s1081_s27 }
 0x434   :  { %v235_v11 = vpop.permute.xlu1 %234 }
 0x435   :  { %v1196_v12 = vmul.f32 %v235_v11, %v218_v3 }
 0x437   :  { %v244_v13 = vpack.c.bf16 %v1196_v12, %v1196_v12 }
 0x439   :  { %250 = vrot.lane.b32.xlu2 %v244_v13, %s1082_s2  ;;  %v403_v13 = vld [vmem:[#allocation2 + $0x8] sm:$0x3] }
 0x493   :  { %v251_v14 = vpop.permute.xlu2 %250 }
 0x494   :  { %879 = vmatmul.msk.bf16.vlgmr.msra.gmra.mxu3 %vm98_vm3, %v251_v14 }
 0x517   :  { %v276_v16 = vpop.f32.mrf.mxu3 }
 0x518   :  { %v280_v17 = vadd.f32 %v276_v16, %v243_v15 }
 0x51a   :  { %981 = vtanh.f32 %v280_v17  ;;  %v880_v20 = vmul.f32 -1.442695, %v280_v17 }
 0x51c   :  { %983 = vpow2.f32 %v880_v20 }
 0x51f   :  { %v278_v18 = vpop.f32.mrf.mxu3 }
 0x520   :  { %v982_v19 = vpop.eup %981 }
 0x521   :  { %303 = vrot.lane.b32.xlu0 %v982_v19, %s1081_s27 }
 0x522   :  { %v984_v21 = vpop.eup %983 }
 0x523   :  { %v284_v22 = vadd.f32 1.0, %v984_v21 }
 0x525   :  { %985 = vrcp.f32 %v284_v22  ;;  %v296_v28 = vand.u32 2147483648, %v284_v22  ;;  %vm290_vm13 = vweird.f32 %v284_v22  ;;  %v294_v29 = vand.u32 2147483647, %v284_v22 }
 0x527   :  { %v297_v31 = vor.u32 1.1754944e-38, %v296_v28  ;;  %vm295_vm15 = vcmp.eq.f32.partialorder %v294_v29, 8.507059e+37 }
 0x52b   :  { %v986_v23 = vpop.eup %985 }
 0x52c   :  { %v286_v24 = vmul.f32 %v986_v23, %v284_v22  ;;  %vm291_vm12 = vweird.f32 %v986_v23 }
 0x52d   :  { %vm292_vm14 = vmor %vm290_vm13, %vm291_vm12 }
 0x52e   :  { %v287_v25 = vsub.f32 1.0, %v286_v24 }
 0x530   :  { %v288_v26 = vmul.f32 %v986_v23, %v287_v25 }
 0x532   :  { %v289_v27 = vadd.f32 %v986_v23, %v288_v26 }
 0x534   :  { %v293_v30 = vsel %vm292_vm14, %v986_v23, %v289_v27 }
 0x535   :  { %v298_v33 = vsel %vm295_vm15, %v297_v31, %v293_v30 }
 0x536   :  { %v301_v35 = vmul.f32 %v298_v33, %v231_v7  ;;  %v948_v7 = vld [vmem:[%s1325_s4] sm:$0xff] }
 0x537   :  { %434 = vmatpush.bf16.msrb.mxu1 %v948_v7 }
 0x593   :  { %v304_v32 = vpop.permute.xlu0 %303 }
 0x594   :  { %v306_v34 = vmul.f32 %v304_v32, %v298_v33 }
 0x596   :  { %308 = vrot.lane.b32.xlu1 %v306_v34, %s1082_s2 }
 0x608   :  { %v309_v36 = vpop.permute.xlu1 %308 }
 0x609   :  { %v311_v37 = vadd.f32 %v309_v36, %v301_v35 }
 0x60b   :  { %987 = vtanh.f32 %v311_v37 }
 0x611   :  { %v988_v38 = vpop.eup %987 }
 0x612   :  { %314 = vrot.lane.b32.xlu2 %v988_v38, %s1081_s27  ;;  %v950_v38 = vld [vmem:[%s1325_s4] sm:$0xff] }
 0x66c   :  { %v315_v41 = vpop.permute.xlu2 %314 }
 0x66d   :  { %v1211_v42 = vmul.f32 %v315_v41, %v298_v33 }
 0x66f   :  { %v324_v43 = vpack.c.bf16 %v1211_v42, %v1211_v42 }
 0x671   :  { %330 = vrot.lane.b32.xlu0 %v324_v43, %s1082_s2 }
 0x6e3   :  { %v331_v44 = vpop.permute.xlu0 %330 }
 0x6e4   :  { %889 = vmatmul.msk.bf16.vlgmr.msrb.gmra.mxu0 %vm98_vm3, %v331_v44  ;;  %v483_v44 = vld [vmem:[#allocation2 + $0xa] sm:$0x3] }
 0x761   :  { %v356_v47 = vpop.f32.mrf.mxu0 }
 0x762   :  { %v360_v48 = vadd.f32 %v356_v47, %v323_v45 }
 0x764   :  { %989 = vtanh.f32 %v360_v48  ;;  %v890_v51 = vmul.f32 -1.442695, %v360_v48 }
 0x766   :  { %991 = vpow2.f32 %v890_v51 }
 0x769   :  { %v358_v49 = vpop.f32.mrf.mxu0 }
 0x76a   :  { %v990_v50 = vpop.eup %989 }
 0x76b   :  { %383 = vrot.lane.b32.xlu1 %v990_v50, %s1081_s27 }
 0x76c   :  { %v992_v52 = vpop.eup %991 }
 0x76d   :  { %v364_v53 = vadd.f32 1.0, %v992_v52 }
 0x76f   :  { %993 = vrcp.f32 %v364_v53  ;;  %v376_v59 = vand.u32 2147483648, %v364_v53  ;;  %vm370_vm2 = vweird.f32 %v364_v53  ;;  %v374_v60 = vand.u32 2147483647, %v364_v53 }
 0x771   :  { %v377_v62 = vor.u32 1.1754944e-38, %v376_v59  ;;  %vm375_vm5 = vcmp.eq.f32.partialorder %v374_v60, 8.507059e+37 }
 0x775   :  { %v994_v54 = vpop.eup %993 }
 0x776   :  { %v366_v55 = vmul.f32 %v994_v54, %v364_v53  ;;  %vm371_vm0 = vweird.f32 %v994_v54 }
 0x777   :  { %vm372_vm4 = vmor %vm370_vm2, %vm371_vm0 }
 0x778   :  { %v367_v56 = vsub.f32 1.0, %v366_v55 }
 0x77a   :  { %v368_v57 = vmul.f32 %v994_v54, %v367_v56 }
 0x77c   :  { %v369_v58 = vadd.f32 %v994_v54, %v368_v57 }
 0x77e   :  { %v373_v61 = vsel %vm372_vm4, %v994_v54, %v369_v58 }
 0x77f   :  { %v378_v0 = vsel %vm375_vm5, %v377_v62, %v373_v61 }
 0x780   :  { %v381_v2 = vmul.f32 %v378_v0, %v311_v37  ;;  %v951_v37 = vld [vmem:[%s1325_s4 + $0x8] sm:$0xff] }
 0x781   :  { %513 = vmatpush.bf16.msrb.mxu2 %v951_v37  ;;  %v955_v37 = vld [vmem:[%s1325_s4 + $0x8] sm:$0xff] }
 0x782   :  { %673 = vmatpush.bf16.msra.mxu0 %v955_v37 }
 0x785   :  { %514 = vmatpush.bf16.msrb.mxu2 %v950_v38  ;;  %v954_v38 = vld [vmem:[%s1325_s4] sm:$0xff] }
 0x786   :  { %674 = vmatpush.bf16.msra.mxu0 %v954_v38 }
 0x7dd   :  { %v384_v63 = vpop.permute.xlu1 %383 }
 0x7de   :  { %v386_v1 = vmul.f32 %v384_v63, %v378_v0 }
 0x7e0   :  { %388 = vrot.lane.b32.xlu2 %v386_v1, %s1082_s2 }
 0x83a   :  { %v389_v3 = vpop.permute.xlu2 %388 }
 0x83b   :  { %v391_v4 = vadd.f32 %v389_v3, %v381_v2 }
 0x83d   :  { %995 = vtanh.f32 %v391_v4 }
 0x843   :  { %v996_v5 = vpop.eup %995 }
 0x844   :  { %394 = vrot.lane.b32.xlu0 %v996_v5, %s1081_s27  ;;  %v953_v5 = vld [vmem:[%s1325_s4 + $0x8] sm:$0xff]  ;;  %s1083_s4 = smov 96  }
 0x845   :  { %593 = vmatpush.bf16.msrb.mxu3 %v953_v5 }
 0x849   :  { %594 = vmatpush.bf16.msrb.mxu3 %v952_v6 }
 0x8b6   :  { %v395_v8 = vpop.permute.xlu0 %394 }
 0x8b7   :  { %v1226_v9 = vmul.f32 %v395_v8, %v378_v0 }
 0x8b9   :  { %v404_v10 = vpack.c.bf16 %v1226_v9, %v1226_v9 }
 0x8bb   :  { %410 = vrot.lane.b32.xlu1 %v404_v10, %s1082_s2 }
 0x92d   :  { %v411_v11 = vpop.permute.xlu1 %410 }
 0x92e   :  { %899 = vmatmul.msk.bf16.vlgmr.msrb.gmra.mxu1 %vm98_vm3, %v411_v11 }
 0x9ab   :  { %v436_v14 = vpop.f32.mrf.mxu1 }
 0x9ac   :  { %v440_v15 = vadd.f32 %v436_v14, %v403_v13  ;;  %v563_v13 = vld [vmem:[#allocation2 + $0xc] sm:$0x3] }
 0x9ae   :  { %997 = vtanh.f32 %v440_v15  ;;  %v900_v18 = vmul.f32 -1.442695, %v440_v15 }
 0x9b0   :  { %999 = vpow2.f32 %v900_v18 }
 0x9b3   :  { %v438_v16 = vpop.f32.mrf.mxu1 }
 0x9b4   :  { %v998_v17 = vpop.eup %997 }
 0x9b5   :  { %463 = vrot.lane.b32.xlu2 %v998_v17, %s1081_s27 }
 0x9b6   :  { %v1000_v19 = vpop.eup %999 }
 0x9b7   :  { %v444_v20 = vadd.f32 1.0, %v1000_v19 }
 0x9b9   :  { %1001 = vrcp.f32 %v444_v20  ;;  %v456_v26 = vand.u32 2147483648, %v444_v20  ;;  %vm450_vm7 = vweird.f32 %v444_v20  ;;  %v454_v27 = vand.u32 2147483647, %v444_v20 }
 0x9bb   :  { %v457_v29 = vor.u32 1.1754944e-38, %v456_v26  ;;  %vm455_vm9 = vcmp.eq.f32.partialorder %v454_v27, 8.507059e+37 }
 0x9bf   :  { %v1002_v21 = vpop.eup %1001 }
 0x9c0   :  { %v446_v22 = vmul.f32 %v1002_v21, %v444_v20  ;;  %vm451_vm6 = vweird.f32 %v1002_v21 }
 0x9c1   :  { %vm452_vm8 = vmor %vm450_vm7, %vm451_vm6 }
 0x9c2   :  { %v447_v23 = vsub.f32 1.0, %v446_v22 }
 0x9c4   :  { %v448_v24 = vmul.f32 %v1002_v21, %v447_v23 }
 0x9c6   :  { %v449_v25 = vadd.f32 %v1002_v21, %v448_v24 }
 0x9c8   :  { %v453_v28 = vsel %vm452_vm8, %v1002_v21, %v449_v25 }
 0x9c9   :  { %v458_v31 = vsel %vm455_vm9, %v457_v29, %v453_v28 }
 0x9ca   :  { %v461_v33 = vmul.f32 %v458_v31, %v391_v4 }
 0xa0f   :  { %v464_v30 = vpop.permute.xlu2 %463 }
 0xa10   :  { %v466_v32 = vmul.f32 %v464_v30, %v458_v31 }
 0xa12   :  { %468 = vrot.lane.b32.xlu0 %v466_v32, %s1082_s2 }
 0xa84   :  { %v469_v34 = vpop.permute.xlu0 %468 }
 0xa85   :  { %v471_v35 = vadd.f32 %v469_v34, %v461_v33 }
 0xa87   :  { %1003 = vtanh.f32 %v471_v35 }
 0xa8d   :  { %v1004_v36 = vpop.eup %1003 }
 0xa8e   :  { %474 = vrot.lane.b32.xlu1 %v1004_v36, %s1081_s27 }
 0xb00   :  { %v475_v39 = vpop.permute.xlu1 %474 }
 0xb01   :  { %v1241_v40 = vmul.f32 %v475_v39, %v458_v31 }
 0xb03   :  { %v484_v41 = vpack.c.bf16 %v1241_v40, %v1241_v40 }
 0xb05   :  { %490 = vrot.lane.b32.xlu2 %v484_v41, %s1082_s2 }
 0xb5f   :  { %v491_v43 = vpop.permute.xlu2 %490 }
 0xb60   :  { %909 = vmatmul.msk.bf16.vlgmr.msrb.gmra.mxu2 %vm98_vm3, %v491_v43 }
 0xbe3   :  { %v516_v45 = vpop.f32.mrf.mxu2 }
 0xbe4   :  { %v520_v47 = vadd.f32 %v516_v45, %v483_v44  ;;  %v643_v45 = vld [vmem:[#allocation2 + $0xe] sm:$0x3] }
 0xbe6   :  { %1005 = vtanh.f32 %v520_v47  ;;  %v910_v50 = vmul.f32 -1.442695, %v520_v47 }
 0xbe8   :  { %1007 = vpow2.f32 %v910_v50 }
 0xbeb   :  { %v518_v48 = vpop.f32.mrf.mxu2 }
 0xbec   :  { %v1006_v49 = vpop.eup %1005 }
 0xbed   :  { %543 = vrot.lane.b32.xlu0 %v1006_v49, %s1081_s27 }
 0xbee   :  { %v1008_v51 = vpop.eup %1007 }
 0xbef   :  { %v524_v52 = vadd.f32 1.0, %v1008_v51 }
 0xbf1   :  { %1009 = vrcp.f32 %v524_v52  ;;  %v536_v58 = vand.u32 2147483648, %v524_v52  ;;  %vm530_vm11 = vweird.f32 %v524_v52  ;;  %v534_v59 = vand.u32 2147483647, %v524_v52 }
 0xbf3   :  { %v537_v61 = vor.u32 1.1754944e-38, %v536_v58  ;;  %vm535_vm13 = vcmp.eq.f32.partialorder %v534_v59, 8.507059e+37 }
 0xbf7   :  { %v1010_v53 = vpop.eup %1009 }
 0xbf8   :  { %v526_v54 = vmul.f32 %v1010_v53, %v524_v52  ;;  %vm531_vm10 = vweird.f32 %v1010_v53 }
 0xbf9   :  { %vm532_vm12 = vmor %vm530_vm11, %vm531_vm10 }
 0xbfa   :  { %v527_v55 = vsub.f32 1.0, %v526_v54 }
 0xbfc   :  { %v528_v56 = vmul.f32 %v1010_v53, %v527_v55 }
 0xbfe   :  { %v529_v57 = vadd.f32 %v1010_v53, %v528_v56 }
 0xc00   :  { %v533_v60 = vsel %vm532_vm12, %v1010_v53, %v529_v57 }
 0xc01   :  { %v538_v63 = vsel %vm535_vm13, %v537_v61, %v533_v60 }
 0xc02   :  { %v541_v1 = vmul.f32 %v538_v63, %v471_v35 }
 0xc5f   :  { %v544_v62 = vpop.permute.xlu0 %543 }
 0xc60   :  { %v546_v0 = vmul.f32 %v544_v62, %v538_v63 }
 0xc62   :  { %548 = vrot.lane.b32.xlu1 %v546_v0, %s1082_s2 }
 0xcd4   :  { %v549_v2 = vpop.permute.xlu1 %548 }
 0xcd5   :  { %v551_v3 = vadd.f32 %v549_v2, %v541_v1 }
 0xcd7   :  { %1011 = vtanh.f32 %v551_v3 }
 0xcdd   :  { %v1012_v4 = vpop.eup %1011 }
 0xcde   :  { %554 = vrot.lane.b32.xlu2 %v1012_v4, %s1081_s27 }
 0xd38   :  { %v555_v7 = vpop.permute.xlu2 %554 }
 0xd39   :  { %v1256_v8 = vmul.f32 %v555_v7, %v538_v63 }
 0xd3b   :  { %v564_v10 = vpack.c.bf16 %v1256_v8, %v1256_v8 }
 0xd3d   :  { %570 = vrot.lane.b32.xlu0 %v564_v10, %s1082_s2 }
 0xdaf   :  { %v571_v11 = vpop.permute.xlu0 %570 }
 0xdb0   :  { %919 = vmatmul.msk.bf16.vlgmr.msrb.gmra.mxu3 %vm98_vm3, %v571_v11 }
 0xe33   :  { %v596_v14 = vpop.f32.mrf.mxu3 }
 0xe34   :  { %v600_v15 = vadd.f32 %v596_v14, %v563_v13 }
 0xe36   :  { %1013 = vtanh.f32 %v600_v15  ;;  %v920_v18 = vmul.f32 -1.442695, %v600_v15 }
 0xe38   :  { %1015 = vpow2.f32 %v920_v18 }
 0xe3b   :  { %v598_v16 = vpop.f32.mrf.mxu3 }
 0xe3c   :  { %v1014_v17 = vpop.eup %1013 }
 0xe3d   :  { %623 = vrot.lane.b32.xlu1 %v1014_v17, %s1081_s27 }
 0xe3e   :  { %v1016_v19 = vpop.eup %1015 }
 0xe3f   :  { %v604_v20 = vadd.f32 1.0, %v1016_v19 }
 0xe41   :  { %1017 = vrcp.f32 %v604_v20  ;;  %v616_v26 = vand.u32 2147483648, %v604_v20  ;;  %vm610_vm15 = vweird.f32 %v604_v20  ;;  %v614_v27 = vand.u32 2147483647, %v604_v20 }
 0xe43   :  { %v617_v29 = vor.u32 1.1754944e-38, %v616_v26  ;;  %vm615_vm2 = vcmp.eq.f32.partialorder %v614_v27, 8.507059e+37 }
 0xe47   :  { %v1018_v21 = vpop.eup %1017 }
 0xe48   :  { %v606_v22 = vmul.f32 %v1018_v21, %v604_v20  ;;  %vm611_vm14 = vweird.f32 %v1018_v21 }
 0xe49   :  { %vm612_vm0 = vmor %vm610_vm15, %vm611_vm14 }
 0xe4a   :  { %v607_v23 = vsub.f32 1.0, %v606_v22  ;;  %v956_v22 = vld [vmem:[%s1327_s6] sm:$0xff] }
 0xe4c   :  { %v608_v24 = vmul.f32 %v1018_v21, %v607_v23 }
 0xe4e   :  { %v609_v25 = vadd.f32 %v1018_v21, %v608_v24 }
 0xe50   :  { %v613_v28 = vsel %vm612_vm0, %v1018_v21, %v609_v25 }
 0xe51   :  { %v618_v31 = vsel %vm615_vm2, %v617_v29, %v613_v28 }
 0xe52   :  { %v621_v33 = vmul.f32 %v618_v31, %v551_v3 }
 0xeaf   :  { %v624_v30 = vpop.permute.xlu1 %623 }
 0xeb0   :  { %v626_v32 = vmul.f32 %v624_v30, %v618_v31 }
 0xeb2   :  { %628 = vrot.lane.b32.xlu2 %v626_v32, %s1082_s2 }
 0xf0c   :  { %v629_v34 = vpop.permute.xlu2 %628 }
 0xf0d   :  { %v631_v35 = vadd.f32 %v629_v34, %v621_v33 }
 0xf0f   :  { %1019 = vtanh.f32 %v631_v35 }
 0xf15   :  { %v1020_v36 = vpop.eup %1019 }
 0xf16   :  { %634 = vrot.lane.b32.xlu0 %v1020_v36, %s1081_s27 }
 0xf88   :  { %v635_v39 = vpop.permute.xlu0 %634 }
 0xf89   :  { %v637_v41 = vmul.f32 %v635_v39, %v618_v31 }
 0xf8b   :  { %v644_v43 = vpack.c.bf16 %v637_v41, %v637_v41 }
 0xf8d   :  { %650 = vrot.lane.b32.xlu1 %v644_v43, %s1082_s2 }
 0xfff   :  { %v651_v44 = vpop.permute.xlu1 %650 }
0x1000   :  { %929 = vmatmul.msk.bf16.vlgmr.msra.gmra.mxu0 %vm98_vm3, %v651_v44 }
0x107d   :  { %v676_v47 = vpop.f32.mrf.mxu0 }
0x107e   :  { %v680_v48 = vadd.f32 %v676_v47, %v643_v45 }
0x1080   :  { %1021 = vtanh.f32 %v680_v48  ;;  %v930_v51 = vmul.f32 -1.442695, %v680_v48 }
0x1082   :  { %1023 = vpow2.f32 %v930_v51 }
0x1085   :  { %v678_v49 = vpop.f32.mrf.mxu0 }
0x1086   :  { %v1022_v50 = vpop.eup %1021 }
0x1087   :  { %703 = vrot.lane.b32.xlu2 %v1022_v50, %s1081_s27 }
0x1088   :  { %v1024_v52 = vpop.eup %1023 }
0x1089   :  { %v684_v53 = vadd.f32 1.0, %v1024_v52  ;;  %v964_v52 = vld [vmem:[#allocation6] ss:$0 sm:$0xff] }
0x108b   :  { %1025 = vrcp.f32 %v684_v53  ;;  %v696_v59 = vand.u32 2147483648, %v684_v53  ;;  %vm690_vm5 = vweird.f32 %v684_v53  ;;  %v694_v60 = vand.u32 2147483647, %v684_v53 }
0x108d   :  { %v697_v61 = vor.u32 1.1754944e-38, %v696_v59  ;;  %vm695_vm7 = vcmp.eq.f32.partialorder %v694_v60, 8.507059e+37 }
0x108f   :  { %158 = vrot.lane.b32.xlu2 %v1181_v46, %s1082_s2 }
0x1091   :  { %v1026_v54 = vpop.eup %1025 }
0x1092   :  { %v686_v55 = vmul.f32 %v1026_v54, %v684_v53  ;;  %vm691_vm4 = vweird.f32 %v1026_v54 }
0x1093   :  { %vm692_vm6 = vmor %vm690_vm5, %vm691_vm4 }
0x1094   :  { %v687_v56 = vsub.f32 1.0, %v686_v55 }
0x1096   :  { %v688_v57 = vmul.f32 %v1026_v54, %v687_v56 }
0x1097   :  { %399 = vrot.lane.b32.xlu2 %v1226_v9, %s1082_s2 }
0x1098   :  { %v689_v58 = vadd.f32 %v1026_v54, %v688_v57 }
0x109a   :  { %v693_v46 = vsel %vm692_vm6, %v1026_v54, %v689_v58 }
0x109b   :  { %v698_v62 = vsel %vm695_vm7, %v697_v61, %v693_v46 }
0x109c   :  { %v701_v3 = vmul.f32 %v698_v62, %v631_v35 }
0x109f   :  { %639 = vrot.lane.b32.xlu2 %v637_v41, %s1082_s2 }
0x10e1   :  { %v704_v9 = vpop.permute.xlu2 %703 }
0x10e2   :  { %v706_v63 = vmul.f32 %v704_v9, %v698_v62 }
0x10e4   :  { %708 = vrot.lane.b32.xlu0 %v706_v63, %s1082_s2 }
0x10e9   :  { %v159_v0 = vpop.permute.xlu2 %158 }
0x10ea   :  { %162 = vst.msk [vmem:[#allocation3] sm:$0x3] %vm42_vm1, %v159_v0 }
0x10ec   :  { %239 = vrot.lane.b32.xlu0 %v1196_v12, %s1082_s2 }
0x10f1   :  { %v400_v1 = vpop.permute.xlu2 %399 }
0x10f2   :  { %402 = vst.msk [vmem:[#allocation3 + $0x6] sm:$0x3] %vm42_vm1, %v400_v1 }
0x10f4   :  { %479 = vrot.lane.b32.xlu0 %v1241_v40, %s1082_s2  ;;  %v957_v40 = vld [vmem:[%s1327_s6 + $0x8] sm:$0xff]  ;;  %s1084_s6 = smov [#allocation7]  }
0x10f5   :  { %803 = vmatpush.bf16.msra.mxu1 %v957_v40  ;;  %s821_s13 = sshll.u32 %s1084_s6, 4  ;;  %s822_s13 = int_to_ptr.vmem [resolvable:$true] %s821_s13 }
0x10f9   :  { %v640_v2 = vpop.permute.xlu2 %639  ;;  %804 = vmatpush.bf16.msra.mxu1 %v956_v22 }
0x10fa   :  { %642 = vst.msk [vmem:[#allocation3 + $0xc] sm:$0x3] %vm42_vm1, %v640_v2 }
0x1156   :  { %v709_v4 = vpop.permute.xlu0 %708 }
0x1157   :  { %v711_v5 = vadd.f32 %v709_v4, %v701_v3 }
0x1159   :  { %1027 = vtanh.f32 %v711_v5 }
0x115e   :  { %v240_v6 = vpop.permute.xlu0 %239 }
0x115f   :  { %v1028_v7 = vpop.eup %1027  ;;  %242 = vst.msk [vmem:[#allocation3 + $0x2] sm:$0x3] %vm42_vm1, %v240_v6 }
0x1160   :  { %714 = vrot.lane.b32.xlu1 %v1028_v7, %s1081_s27 }
0x1166   :  { %v480_v12 = vpop.permute.xlu0 %479 }
0x1167   :  { %482 = vst.msk [vmem:[#allocation3 + $0x8] sm:$0x3] %vm42_vm1, %v480_v12 }
0x1168   :  { %319 = vrot.lane.b32.xlu1 %v1211_v42, %s1082_s2 }
0x1170   :  { %559 = vrot.lane.b32.xlu1 %v1256_v8, %s1082_s2  ;;  %v737_v8 = vlaneseq }
0x1172   :  { %v738_v15 = vshrl.u32 %v737_v8, 7  ;;  %v744_v17 = vand.u32 127, %v737_v8 }
0x1174   :  { %v739_v16 = vadd.s32 8, %v738_v15  ;;  %v745_v18 = vmul.u32 32, %v738_v15 }
0x1176   :  { %v746_v19 = vmul.u32 32, %v739_v16  ;;  %v747_v20 = vadd.s32 %v745_v18, %v744_v17 }
0x1178   :  { %725 = vrot.lane.b32.xlu1 %v711_v5, %s1083_s4  ;;  %v748_v21 = vadd.s32 %v746_v19, %v744_v17  ;;  %v749_v23 = vshrl.u32 %v747_v20, 16 }
0x117a   :  { %v750_v24 = vshrl.u32 %v748_v21, 16  ;;  %v751_v25 = vxor.u32 %v749_v23, %v747_v20 }
0x117c   :  { %v752_v26 = vxor.u32 %v750_v24, %v748_v21  ;;  %v753_v27 = vmul.u32 2246822507, %v751_v25 }
0x117e   :  { %v754_v28 = vmul.u32 2246822507, %v752_v26  ;;  %v755_v29 = vshrl.u32 %v753_v27, 13 }
0x1180   :  { %v756_v30 = vshrl.u32 %v754_v28, 13  ;;  %v757_v31 = vxor.u32 %v755_v29, %v753_v27 }
0x1182   :  { %v758_v32 = vxor.u32 %v756_v30, %v754_v28  ;;  %v759_v33 = vmul.u32 3266489909, %v757_v31 }
0x1184   :  { %v760_v34 = vmul.u32 3266489909, %v758_v32  ;;  %v761_v35 = vshrl.u32 %v759_v33, 16 }
0x1186   :  { %v762_v36 = vshrl.u32 %v760_v34, 16  ;;  %v763_v38 = vxor.u32 %v761_v35, %v759_v33 }
0x1188   :  { %v764_v39 = vxor.u32 %v762_v36, %v760_v34  ;;  %v765_v43 = vand.u32 8388607, %v763_v38 }
0x118a   :  { %v766_v44 = vand.u32 8388607, %v764_v39  ;;  %vm767_vm8 = vcmp.lt.s32.totalorder %v765_v43, 4194304 }
0x118c   :  { %vm768_vm9 = vcmp.lt.s32.totalorder %v766_v44, 4194304 }
0x11d2   :  { %v715_v10 = vpop.permute.xlu1 %714 }
0x11d3   :  { %v717_v11 = vmul.f32 %v715_v10, %v698_v62 }
0x11d5   :  { %719 = vrot.lane.b32.xlu0 %v717_v11, %s1082_s2 }
0x11da   :  { %v320_v13 = vpop.permute.xlu1 %319 }
0x11db   :  { %322 = vst.msk [vmem:[#allocation3 + $0x4] sm:$0x3] %vm42_vm1, %v320_v13 }
0x11e2   :  { %v560_v14 = vpop.permute.xlu1 %559  ;;  %v734_v41 = vld [vmem:[#allocation3] sm:$0xff] }
0x11e3   :  { %562 = vst.msk [vmem:[#allocation3 + $0xa] sm:$0x3] %vm42_vm1, %v560_v14  ;;  %v769_v45 = vmul.f32 2.0, %v734_v41 }
0x11e5   :  { %v771_v49 = vsel %vm767_vm8, %v769_v45, 0.0 }
0x11ea   :  { %v726_v42 = vpop.permute.xlu1 %725 }
0x11eb   :  { %728 = vst.msk [vmem:[#allocation5] sm:$0x3] %vm42_vm1, %v726_v42 }
0x11ec   :  { %733 = vst.msk [vmem:[#allocation9] sm:$0x3] %vm42_vm1, %v726_v42 }
0x11ed   :  { %837 = dma.vmem_to_hbm [thread:$0]  %s833_s18, 32, %s835_s21, [#allocation10]  }
0x1247   :  { %v720_v37 = vpop.permute.xlu0 %719 }
0x1248   :  { %722 = vst.msk [vmem:[#allocation3 + $0xe] sm:$0x3] %vm42_vm1, %v720_v37 }
0x1249   :  { %723 = vst.msk [vmem:[#allocation4] sm:$0x3] %vm42_vm1, %v720_v37 }
0x124a   :  { %732 = vst.msk [vmem:[#allocation7] sm:$0x3] %vm42_vm1, %v720_v37  ;;  %vm811_vm1 = vcmask 7168  }
0x124b   :  { %826 = dma.vmem_to_hbm [thread:$0]  %s822_s13, 32, %s824_s16, [#allocation8]  }
0x124f   :  { %v735_v47 = vld [vmem:[#allocation3 + $0x8] sm:$0xff] }
0x1250   :  { %v770_v48 = vmul.f32 2.0, %v735_v47 }
0x1252   :  { %v772_v50 = vsel %vm768_vm9, %v770_v48, 0.0 }
0x1253   :  { %v773_v51 = vpack.c.bf16 %v772_v50, %v771_v49 }
0x1255   :  { %939 = vmatmul.msk.bf16.vlgmr.msra.gmra.mxu1 %vm98_vm3, %v773_v51 }
0x12d2   :  { %v806_v53 = vpop.f32.mrf.mxu1 }
0x12d3   :  { %v807_v54 = vadd.f32 %v964_v52, %v806_v53 }
0x12d5   :  { %812 = vst.msk [vmem:[%s1329_s8] sm:$0xff] %vm811_vm1, %v807_v54 }
0x12da   :  { %v808_v55 = vpop.f32.mrf.mxu1 }
0x12db   :  { %v809_v56 = vadd.f32 %v964_v52, %v808_v55 }
0x12dd   :  { %813 = vst.msk [vmem:[%s1329_s8 + $0x8] sm:$0xff] %vm811_vm1, %v809_v56 }
0x12de   :  { %1077 = dma.done.wait [#allocation8], 32  }
0x12df   :  { %1078 = vsyncadd [#allocation8], 4294967264 }
0x12e0   :  { %1079 = dma.done.wait [#allocation10], 32  }
0x12e1   :  { %1080 = vsyncadd [#allocation10], 4294967264 }
0x12e2   :  { %848 = vsyncpa [#allocation8], 1 }
0x12e3   :  { %849 = vsyncpa [#allocation10], 1 }

</bundles_post_ra>
